<compile_context>
chip_gen: v7x
topology: tpu7x:2x2x1
jax: 0.10.0
libtpu: 0.0.40
codegen_flags: <defaults>
</compile_context>

<pallas_src>
import functools

import jax
import jax.numpy as jnp
import numpy as np
from jax.experimental import pallas as pl
from jax.experimental.pallas import tpu as pltpu

_PAD_ROWS = 8  # sublane-aligned zero padding for the dy taps (>= (K-1)//2)


# ------------------------------- Pallas kernel --------------------------------
def _trunk_kernel(*refs, img_h, ksize, n_res):
    """Fused TrunkBranch forward on lane-dense (N*H, W*C) activations.

    refs = (x_ref, w1, b1, w2, b2, ..., w_{2*n_res}, b_{2*n_res}, o_ref)
      x_ref : (N*H, W*C)    activations, channel fastest inside each lane group
      w*    : (K*W*C, W*C)  block-Toeplitz conv matrix (dx taps + Cin folded in)
      b*    : (1, W*C)      bias tiled across W
      o_ref : (N*H, W*C)
    """
    x_ref = refs[0]
    o_ref = refs[-1]
    wb_refs = refs[1:-1]

    nh, wc = x_ref.shape
    pad = (ksize - 1) // 2

    # Row index within each image (sublane axis stacks N images of H rows);
    # used to zero rows that a dy tap pulls in across an image boundary.
    row = jax.lax.broadcasted_iota(jnp.int32, (nh, wc), 0) % img_h
    zpad = jnp.zeros((_PAD_ROWS, wc), jnp.float32)

    def conv(a, w_ref, b_ref):
        # Aligned zero padding so the dy taps are plain static sublane slices.
        apad = jnp.concatenate([zpad, a, zpad], axis=0)          # (nh+16, wc)
        taps = []
        for off in range(-pad, pad + 1):
            t = apad[_PAD_ROWS + off:_PAD_ROWS + off + nh, :]    # t[r] = a[r+off]
            if off != 0:
                valid = ((row + off) >= 0) & ((row + off) < img_h)
                t = jnp.where(valid, t, jnp.zeros_like(t))
            taps.append(t)
        # Stack the K dy taps on the lane axis; the dx taps / Cin contraction
        # live inside the block-Toeplitz weight -> one MXU matmul per conv.
        p = jnp.concatenate(taps, axis=1) if len(taps) > 1 else taps[0]
        y = jnp.dot(p, w_ref[...], preferred_element_type=jnp.float32)
        return y + b_ref[...]

    x = x_ref[...].astype(jnp.float32)
    for r in range(n_res):
        w_a, b_a, w_b, b_b = wb_refs[4 * r:4 * r + 4]
        h = jnp.maximum(conv(x, w_a, b_a), 0.0)   # conv -> ReLU
        x = x + conv(h, w_b, b_b)                 # conv -> residual add (res_scale=1)

    o_ref[...] = x.astype(o_ref.dtype)


# --------------------------- host-side weight prep ----------------------------
def _make_big_weight(w_hwio, img_w):
    """(K, K, Cin, Cout) HWIO conv weight -> (K*W*Cin, W*Cout) block matrix.

    Row block dy, entry [w*Cin+ci, w'*Cout+co] = w_hwio[dy, w-w'+pad, ci, co]
    (absent entries implement the zero padding along W)."""
    K = w_hwio.shape[0]
    pad = (K - 1) // 2
    blocks = []
    for dy in range(K):
        m = None
        for dx in range(K):
            shift = jnp.eye(img_w, k=pad - dx, dtype=w_hwio.dtype)  # [w, w + pad - dx]
            blk = jnp.kron(shift, w_hwio[dy, dx])
            m = blk if m is None else m + blk
        blocks.append(m)
    return jnp.concatenate(blocks, axis=0)


# ---------------------------------- wrapper -----------------------------------
def trunk_branch_pallas(x_nchw, params):
    """TrunkBranch.forward.

    x_nchw: (N, C, H, W) float32 (PyTorch layout).
    params: list of (w1, b1, w2, b2) per ResBlock; w: (Cout, Cin, K, K), b: (C,).
    """
    N, C, H, W = x_nchw.shape
    K = params[0][0].shape[-1]
    assert K % 2 == 1 and (K - 1) // 2 <= _PAD_ROWS
    NH, WC = N * H, W * C
    n_res = len(params)

    # NCHW -> lane-dense (N*H, W*C)
    x2 = jnp.transpose(x_nchw, (0, 2, 3, 1)).reshape(NH, WC)

    big_args = []
    for (w1, b1, w2, b2) in params:
        for w, b in ((w1, b1), (w2, b2)):
            w_hwio = jnp.transpose(w, (2, 3, 1, 0))            # (K, K, Cin, Cout)
            big_args.append(_make_big_weight(w_hwio, W))       # (K*W*C, W*C)
            big_args.append(jnp.tile(b, W).reshape(1, WC))     # (1, W*C)

    kernel = functools.partial(_trunk_kernel, img_h=H, ksize=K, n_res=n_res)

    wb_specs = []
    for _ in range(2 * n_res):
        wb_specs.append(pl.BlockSpec((K * WC, WC), lambda i: (0, 0)))
        wb_specs.append(pl.BlockSpec((1, WC), lambda i: (0, 0)))

    out2 = pl.pallas_call(
        kernel,
        out_shape=jax.ShapeDtypeStruct((NH, WC), x_nchw.dtype),
        grid_spec=pltpu.PrefetchScalarGridSpec(
            num_scalar_prefetch=0,
            grid=(1,),  # whole (tiny) batch in one step; tile row-bands for big images
            in_specs=[pl.BlockSpec((NH, WC), lambda i: (0, 0))] + wb_specs,
            out_specs=pl.BlockSpec((NH, WC), lambda i: (0, 0)),
        ),
        compiler_params=pltpu.CompilerParams(
            dimension_semantics=("arbitrary",)),
    )(x2, *big_args)

    # back to NCHW
    return jnp.transpose(out2.reshape(N, H, W, C), (0, 3, 1, 2))


# ----------------------------- reference (pure JAX) ----------------------------
def _conv_ref(x, w, b):
    y = jax.lax.conv_general_dilated(
        x, w, window_strides=(1, 1), padding="SAME",
        dimension_numbers=("NCHW", "OIHW", "NCHW"))
    return y + b[None, :, None, None]


def trunk_branch_ref(x, params):
    out = x
    for (w1, b1, w2, b2) in params:
        res = _conv_ref(out, w1, b1)
        res = jnp.maximum(res, 0.0)
        res = _conv_ref(res, w2, b2)
        out = res + out
    return out


# ------------------------------------ main -------------------------------------
if __name__ == "__main__":
    N, C, H, W = 2, 8, 16, 16   # n_feat=8, kernel_size=3  (W*C = 128 lanes)
    K = 3

    key = jax.random.PRNGKey(0)
    kx, *kp = jax.random.split(key, 1 + 8)
    x = jax.random.normal(kx, (N, C, H, W), jnp.float32)

    # Deterministic parameters in PyTorch nn.Conv2d layout: 2 ResBlocks x 2 convs.
    fan_in = C * K * K
    scale = 1.0 / np.sqrt(fan_in)
    params = []
    ki = iter(kp)
    for _ in range(2):  # two ResBlocks
        w1 = jax.random.uniform(next(ki), (C, C, K, K), jnp.float32, -scale, scale)
        b1 = jax.random.uniform(next(ki), (C,), jnp.float32, -scale, scale)
        w2 = jax.random.uniform(next(ki), (C, C, K, K), jnp.float32, -scale, scale)
        b2 = jax.random.uniform(next(ki), (C,), jnp.float32, -scale, scale)
        params.append((w1, b1, w2, b2))

    out = trunk_branch_pallas(x, params)
    out = jax.block_until_ready(out)

    ref = trunk_branch_ref(x, params)
    np.testing.assert_allclose(np.asarray(out), np.asarray(ref),
                               rtol=1e-4, atol=1e-4)

    print("KERNEL_OK")
</pallas_src>

<mosaic_0001>
module attributes {stable_mosaic.version = 11 : i64} {
  func.func @_trunk_kernel(%arg0: i32, %arg1: memref<32x128xf32, #tpu.memory_space<vmem>>, %arg2: memref<384x128xf32, #tpu.memory_space<vmem>>, %arg3: memref<1x128xf32, #tpu.memory_space<vmem>>, %arg4: memref<384x128xf32, #tpu.memory_space<vmem>>, %arg5: memref<1x128xf32, #tpu.memory_space<vmem>>, %arg6: memref<384x128xf32, #tpu.memory_space<vmem>>, %arg7: memref<1x128xf32, #tpu.memory_space<vmem>>, %arg8: memref<384x128xf32, #tpu.memory_space<vmem>>, %arg9: memref<1x128xf32, #tpu.memory_space<vmem>>, %arg10: memref<32x128xf32, #tpu.memory_space<vmem>>) attributes {dimension_semantics = [#tpu.dimension_semantics<arbitrary>], iteration_bounds = array<i64: 1>, scalar_prefetch = 0 : i64, scratch_operands = 0 : i64, tpu.core_type = #tpu.core_type<tc>, window_params = [{pipeline_mode = #tpu.pipeline_mode<synchronous>, transform_indices = @transform_0, window_bounds = array<i64: 32, 128>}, {pipeline_mode = #tpu.pipeline_mode<synchronous>, transform_indices = @transform_1, window_bounds = array<i64: 384, 128>}, {pipeline_mode = #tpu.pipeline_mode<synchronous>, transform_indices = @transform_2, window_bounds = array<i64: 1, 128>}, {pipeline_mode = #tpu.pipeline_mode<synchronous>, transform_indices = @transform_3, window_bounds = array<i64: 384, 128>}, {pipeline_mode = #tpu.pipeline_mode<synchronous>, transform_indices = @transform_4, window_bounds = array<i64: 1, 128>}, {pipeline_mode = #tpu.pipeline_mode<synchronous>, transform_indices = @transform_5, window_bounds = array<i64: 384, 128>}, {pipeline_mode = #tpu.pipeline_mode<synchronous>, transform_indices = @transform_6, window_bounds = array<i64: 1, 128>}, {pipeline_mode = #tpu.pipeline_mode<synchronous>, transform_indices = @transform_7, window_bounds = array<i64: 384, 128>}, {pipeline_mode = #tpu.pipeline_mode<synchronous>, transform_indices = @transform_8, window_bounds = array<i64: 1, 128>}, {pipeline_mode = #tpu.pipeline_mode<synchronous>, transform_indices = @transform_9, window_bounds = array<i64: 32, 128>}]} {
    %0 = tpu.iota {dimensions = array<i32: 0>} : vector<32x128xi32>
    %c16_i32 = arith.constant 16 : i32
    %c0_i32 = arith.constant 0 : i32
    %1 = arith.cmpi eq, %c16_i32, %c0_i32 : i32
    %c1_i32 = arith.constant 1 : i32
    %2 = arith.select %1, %c1_i32, %c16_i32 : i32
    %3 = vector.broadcast %2 : i32 to vector<32x128xi32>
    %4 = arith.remsi %0, %3 : vector<32x128xi32>
    %c0_i32_0 = arith.constant 0 : i32
    %5 = vector.broadcast %c0_i32_0 : i32 to vector<32x128xi32>
    %6 = arith.cmpi ne, %4, %5 : vector<32x128xi32>
    %c0_i32_1 = arith.constant 0 : i32
    %7 = vector.broadcast %c0_i32_1 : i32 to vector<32x128xi32>
    %8 = arith.cmpi slt, %4, %7 : vector<32x128xi32>
    %c0_i32_2 = arith.constant 0 : i32
    %9 = arith.cmpi slt, %2, %c0_i32_2 : i32
    %10 = vector.broadcast %9 : i1 to vector<32x128xi1>
    %11 = vector.broadcast %10 : vector<32x128xi1> to vector<32x128xi1>
    %12 = arith.xori %8, %11 : vector<32x128xi1>
    %13 = arith.andi %12, %6 : vector<32x128xi1>
    %14 = vector.broadcast %2 : i32 to vector<32x128xi32>
    %15 = arith.addi %4, %14 : vector<32x128xi32>
    %16 = arith.select %13, %15, %4 : vector<32x128xi1>, vector<32x128xi32>
    %cst = arith.constant 0.000000e+00 : f32
    %17 = vector.broadcast %cst : f32 to vector<8x128xf32>
    %c0 = arith.constant 0 : index
    %c0_3 = arith.constant 0 : index
    %18 = vector.load %arg1[%c0, %c0_3] : memref<32x128xf32, #tpu.memory_space<vmem>>, vector<32x128xf32>
    %19 = tpu.concatenate %17, %18, %17 in 0 : vector<8x128xf32>, vector<32x128xf32>, vector<8x128xf32> -> vector<48x128xf32>
    %20 = vector.extract_strided_slice %19 {offsets = [7, 0], sizes = [32, 128], strides = [1, 1]} : vector<48x128xf32> to vector<32x128xf32>
    %c-1_i32 = arith.constant -1 : i32
    %21 = vector.broadcast %c-1_i32 : i32 to vector<32x128xi32>
    %22 = arith.addi %16, %21 : vector<32x128xi32>
    %c0_i32_4 = arith.constant 0 : i32
    %23 = vector.broadcast %c0_i32_4 : i32 to vector<32x128xi32>
    %24 = arith.cmpi sge, %22, %23 : vector<32x128xi32>
    %c-1_i32_5 = arith.constant -1 : i32
    %25 = vector.broadcast %c-1_i32_5 : i32 to vector<32x128xi32>
    %26 = arith.addi %16, %25 : vector<32x128xi32>
    %c16_i32_6 = arith.constant 16 : i32
    %27 = vector.broadcast %c16_i32_6 : i32 to vector<32x128xi32>
    %28 = arith.cmpi slt, %26, %27 : vector<32x128xi32>
    %29 = arith.andi %24, %28 : vector<32x128xi1>
    %cst_7 = arith.constant 0.000000e+00 : f32
    %30 = vector.broadcast %cst_7 : f32 to vector<32x128xf32>
    %31 = arith.select %29, %20, %30 : vector<32x128xi1>, vector<32x128xf32>
    %32 = vector.extract_strided_slice %19 {offsets = [8, 0], sizes = [32, 128], strides = [1, 1]} : vector<48x128xf32> to vector<32x128xf32>
    %33 = vector.extract_strided_slice %19 {offsets = [9, 0], sizes = [32, 128], strides = [1, 1]} : vector<48x128xf32> to vector<32x128xf32>
    %c1_i32_8 = arith.constant 1 : i32
    %34 = vector.broadcast %c1_i32_8 : i32 to vector<32x128xi32>
    %35 = arith.addi %16, %34 : vector<32x128xi32>
    %c0_i32_9 = arith.constant 0 : i32
    %36 = vector.broadcast %c0_i32_9 : i32 to vector<32x128xi32>
    %37 = arith.cmpi sge, %35, %36 : vector<32x128xi32>
    %c1_i32_10 = arith.constant 1 : i32
    %38 = vector.broadcast %c1_i32_10 : i32 to vector<32x128xi32>
    %39 = arith.addi %16, %38 : vector<32x128xi32>
    %c16_i32_11 = arith.constant 16 : i32
    %40 = vector.broadcast %c16_i32_11 : i32 to vector<32x128xi32>
    %41 = arith.cmpi slt, %39, %40 : vector<32x128xi32>
    %42 = arith.andi %37, %41 : vector<32x128xi1>
    %cst_12 = arith.constant 0.000000e+00 : f32
    %43 = vector.broadcast %cst_12 : f32 to vector<32x128xf32>
    %44 = arith.select %42, %33, %43 : vector<32x128xi1>, vector<32x128xf32>
    %45 = tpu.concatenate %31, %32, %44 in 1 : vector<32x128xf32>, vector<32x128xf32>, vector<32x128xf32> -> vector<32x384xf32>
    %c0_13 = arith.constant 0 : index
    %c0_14 = arith.constant 0 : index
    %46 = vector.load %arg2[%c0_13, %c0_14] : memref<384x128xf32, #tpu.memory_space<vmem>>, vector<384x128xf32>
    %cst_15 = arith.constant dense<0.000000e+00> : vector<32x128xf32>
    %47 = tpu.matmul %45, %46, %cst_15 {dimension_numbers = #tpu.dot_dimension_numbers<[1], [0], [0], [1], [0, 0, 1, 1], [], []>} : vector<32x384xf32>, vector<384x128xf32>, vector<32x128xf32> -> vector<32x128xf32>
    %c0_16 = arith.constant 0 : index
    %c0_17 = arith.constant 0 : index
    %48 = vector.load %arg3[%c0_16, %c0_17] : memref<1x128xf32, #tpu.memory_space<vmem>>, vector<1x128xf32>
    %49 = vector.broadcast %48 : vector<1x128xf32> to vector<32x128xf32>
    %50 = arith.addf %47, %49 : vector<32x128xf32>
    %cst_18 = arith.constant 0.000000e+00 : f32
    %51 = vector.broadcast %cst_18 : f32 to vector<32x128xf32>
    %52 = arith.maximumf %50, %51 : vector<32x128xf32>
    %53 = tpu.concatenate %17, %52, %17 in 0 : vector<8x128xf32>, vector<32x128xf32>, vector<8x128xf32> -> vector<48x128xf32>
    %54 = vector.extract_strided_slice %53 {offsets = [7, 0], sizes = [32, 128], strides = [1, 1]} : vector<48x128xf32> to vector<32x128xf32>
    %c-1_i32_19 = arith.constant -1 : i32
    %55 = vector.broadcast %c-1_i32_19 : i32 to vector<32x128xi32>
    %56 = arith.addi %16, %55 : vector<32x128xi32>
    %c0_i32_20 = arith.constant 0 : i32
    %57 = vector.broadcast %c0_i32_20 : i32 to vector<32x128xi32>
    %58 = arith.cmpi sge, %56, %57 : vector<32x128xi32>
    %c-1_i32_21 = arith.constant -1 : i32
    %59 = vector.broadcast %c-1_i32_21 : i32 to vector<32x128xi32>
    %60 = arith.addi %16, %59 : vector<32x128xi32>
    %c16_i32_22 = arith.constant 16 : i32
    %61 = vector.broadcast %c16_i32_22 : i32 to vector<32x128xi32>
    %62 = arith.cmpi slt, %60, %61 : vector<32x128xi32>
    %63 = arith.andi %58, %62 : vector<32x128xi1>
    %cst_23 = arith.constant 0.000000e+00 : f32
    %64 = vector.broadcast %cst_23 : f32 to vector<32x128xf32>
    %65 = arith.select %63, %54, %64 : vector<32x128xi1>, vector<32x128xf32>
    %66 = vector.extract_strided_slice %53 {offsets = [8, 0], sizes = [32, 128], strides = [1, 1]} : vector<48x128xf32> to vector<32x128xf32>
    %67 = vector.extract_strided_slice %53 {offsets = [9, 0], sizes = [32, 128], strides = [1, 1]} : vector<48x128xf32> to vector<32x128xf32>
    %c1_i32_24 = arith.constant 1 : i32
    %68 = vector.broadcast %c1_i32_24 : i32 to vector<32x128xi32>
    %69 = arith.addi %16, %68 : vector<32x128xi32>
    %c0_i32_25 = arith.constant 0 : i32
    %70 = vector.broadcast %c0_i32_25 : i32 to vector<32x128xi32>
    %71 = arith.cmpi sge, %69, %70 : vector<32x128xi32>
    %c1_i32_26 = arith.constant 1 : i32
    %72 = vector.broadcast %c1_i32_26 : i32 to vector<32x128xi32>
    %73 = arith.addi %16, %72 : vector<32x128xi32>
    %c16_i32_27 = arith.constant 16 : i32
    %74 = vector.broadcast %c16_i32_27 : i32 to vector<32x128xi32>
    %75 = arith.cmpi slt, %73, %74 : vector<32x128xi32>
    %76 = arith.andi %71, %75 : vector<32x128xi1>
    %cst_28 = arith.constant 0.000000e+00 : f32
    %77 = vector.broadcast %cst_28 : f32 to vector<32x128xf32>
    %78 = arith.select %76, %67, %77 : vector<32x128xi1>, vector<32x128xf32>
    %79 = tpu.concatenate %65, %66, %78 in 1 : vector<32x128xf32>, vector<32x128xf32>, vector<32x128xf32> -> vector<32x384xf32>
    %c0_29 = arith.constant 0 : index
    %c0_30 = arith.constant 0 : index
    %80 = vector.load %arg4[%c0_29, %c0_30] : memref<384x128xf32, #tpu.memory_space<vmem>>, vector<384x128xf32>
    %cst_31 = arith.constant dense<0.000000e+00> : vector<32x128xf32>
    %81 = tpu.matmul %79, %80, %cst_31 {dimension_numbers = #tpu.dot_dimension_numbers<[1], [0], [0], [1], [0, 0, 1, 1], [], []>} : vector<32x384xf32>, vector<384x128xf32>, vector<32x128xf32> -> vector<32x128xf32>
    %c0_32 = arith.constant 0 : index
    %c0_33 = arith.constant 0 : index
    %82 = vector.load %arg5[%c0_32, %c0_33] : memref<1x128xf32, #tpu.memory_space<vmem>>, vector<1x128xf32>
    %83 = vector.broadcast %82 : vector<1x128xf32> to vector<32x128xf32>
    %84 = arith.addf %81, %83 : vector<32x128xf32>
    %85 = arith.addf %18, %84 : vector<32x128xf32>
    %86 = tpu.concatenate %17, %85, %17 in 0 : vector<8x128xf32>, vector<32x128xf32>, vector<8x128xf32> -> vector<48x128xf32>
    %87 = vector.extract_strided_slice %86 {offsets = [7, 0], sizes = [32, 128], strides = [1, 1]} : vector<48x128xf32> to vector<32x128xf32>
    %c-1_i32_34 = arith.constant -1 : i32
    %88 = vector.broadcast %c-1_i32_34 : i32 to vector<32x128xi32>
    %89 = arith.addi %16, %88 : vector<32x128xi32>
    %c0_i32_35 = arith.constant 0 : i32
    %90 = vector.broadcast %c0_i32_35 : i32 to vector<32x128xi32>
    %91 = arith.cmpi sge, %89, %90 : vector<32x128xi32>
    %c-1_i32_36 = arith.constant -1 : i32
    %92 = vector.broadcast %c-1_i32_36 : i32 to vector<32x128xi32>
    %93 = arith.addi %16, %92 : vector<32x128xi32>
    %c16_i32_37 = arith.constant 16 : i32
    %94 = vector.broadcast %c16_i32_37 : i32 to vector<32x128xi32>
    %95 = arith.cmpi slt, %93, %94 : vector<32x128xi32>
    %96 = arith.andi %91, %95 : vector<32x128xi1>
    %cst_38 = arith.constant 0.000000e+00 : f32
    %97 = vector.broadcast %cst_38 : f32 to vector<32x128xf32>
    %98 = arith.select %96, %87, %97 : vector<32x128xi1>, vector<32x128xf32>
    %99 = vector.extract_strided_slice %86 {offsets = [8, 0], sizes = [32, 128], strides = [1, 1]} : vector<48x128xf32> to vector<32x128xf32>
    %100 = vector.extract_strided_slice %86 {offsets = [9, 0], sizes = [32, 128], strides = [1, 1]} : vector<48x128xf32> to vector<32x128xf32>
    %c1_i32_39 = arith.constant 1 : i32
    %101 = vector.broadcast %c1_i32_39 : i32 to vector<32x128xi32>
    %102 = arith.addi %16, %101 : vector<32x128xi32>
    %c0_i32_40 = arith.constant 0 : i32
    %103 = vector.broadcast %c0_i32_40 : i32 to vector<32x128xi32>
    %104 = arith.cmpi sge, %102, %103 : vector<32x128xi32>
    %c1_i32_41 = arith.constant 1 : i32
    %105 = vector.broadcast %c1_i32_41 : i32 to vector<32x128xi32>
    %106 = arith.addi %16, %105 : vector<32x128xi32>
    %c16_i32_42 = arith.constant 16 : i32
    %107 = vector.broadcast %c16_i32_42 : i32 to vector<32x128xi32>
    %108 = arith.cmpi slt, %106, %107 : vector<32x128xi32>
    %109 = arith.andi %104, %108 : vector<32x128xi1>
    %cst_43 = arith.constant 0.000000e+00 : f32
    %110 = vector.broadcast %cst_43 : f32 to vector<32x128xf32>
    %111 = arith.select %109, %100, %110 : vector<32x128xi1>, vector<32x128xf32>
    %112 = tpu.concatenate %98, %99, %111 in 1 : vector<32x128xf32>, vector<32x128xf32>, vector<32x128xf32> -> vector<32x384xf32>
    %c0_44 = arith.constant 0 : index
    %c0_45 = arith.constant 0 : index
    %113 = vector.load %arg6[%c0_44, %c0_45] : memref<384x128xf32, #tpu.memory_space<vmem>>, vector<384x128xf32>
    %cst_46 = arith.constant dense<0.000000e+00> : vector<32x128xf32>
    %114 = tpu.matmul %112, %113, %cst_46 {dimension_numbers = #tpu.dot_dimension_numbers<[1], [0], [0], [1], [0, 0, 1, 1], [], []>} : vector<32x384xf32>, vector<384x128xf32>, vector<32x128xf32> -> vector<32x128xf32>
    %c0_47 = arith.constant 0 : index
    %c0_48 = arith.constant 0 : index
    %115 = vector.load %arg7[%c0_47, %c0_48] : memref<1x128xf32, #tpu.memory_space<vmem>>, vector<1x128xf32>
    %116 = vector.broadcast %115 : vector<1x128xf32> to vector<32x128xf32>
    %117 = arith.addf %114, %116 : vector<32x128xf32>
    %cst_49 = arith.constant 0.000000e+00 : f32
    %118 = vector.broadcast %cst_49 : f32 to vector<32x128xf32>
    %119 = arith.maximumf %117, %118 : vector<32x128xf32>
    %120 = tpu.concatenate %17, %119, %17 in 0 : vector<8x128xf32>, vector<32x128xf32>, vector<8x128xf32> -> vector<48x128xf32>
    %121 = vector.extract_strided_slice %120 {offsets = [7, 0], sizes = [32, 128], strides = [1, 1]} : vector<48x128xf32> to vector<32x128xf32>
    %c-1_i32_50 = arith.constant -1 : i32
    %122 = vector.broadcast %c-1_i32_50 : i32 to vector<32x128xi32>
    %123 = arith.addi %16, %122 : vector<32x128xi32>
    %c0_i32_51 = arith.constant 0 : i32
    %124 = vector.broadcast %c0_i32_51 : i32 to vector<32x128xi32>
    %125 = arith.cmpi sge, %123, %124 : vector<32x128xi32>
    %c-1_i32_52 = arith.constant -1 : i32
    %126 = vector.broadcast %c-1_i32_52 : i32 to vector<32x128xi32>
    %127 = arith.addi %16, %126 : vector<32x128xi32>
    %c16_i32_53 = arith.constant 16 : i32
    %128 = vector.broadcast %c16_i32_53 : i32 to vector<32x128xi32>
    %129 = arith.cmpi slt, %127, %128 : vector<32x128xi32>
    %130 = arith.andi %125, %129 : vector<32x128xi1>
    %cst_54 = arith.constant 0.000000e+00 : f32
    %131 = vector.broadcast %cst_54 : f32 to vector<32x128xf32>
    %132 = arith.select %130, %121, %131 : vector<32x128xi1>, vector<32x128xf32>
    %133 = vector.extract_strided_slice %120 {offsets = [8, 0], sizes = [32, 128], strides = [1, 1]} : vector<48x128xf32> to vector<32x128xf32>
    %134 = vector.extract_strided_slice %120 {offsets = [9, 0], sizes = [32, 128], strides = [1, 1]} : vector<48x128xf32> to vector<32x128xf32>
    %c1_i32_55 = arith.constant 1 : i32
    %135 = vector.broadcast %c1_i32_55 : i32 to vector<32x128xi32>
    %136 = arith.addi %16, %135 : vector<32x128xi32>
    %c0_i32_56 = arith.constant 0 : i32
    %137 = vector.broadcast %c0_i32_56 : i32 to vector<32x128xi32>
    %138 = arith.cmpi sge, %136, %137 : vector<32x128xi32>
    %c1_i32_57 = arith.constant 1 : i32
    %139 = vector.broadcast %c1_i32_57 : i32 to vector<32x128xi32>
    %140 = arith.addi %16, %139 : vector<32x128xi32>
    %c16_i32_58 = arith.constant 16 : i32
    %141 = vector.broadcast %c16_i32_58 : i32 to vector<32x128xi32>
    %142 = arith.cmpi slt, %140, %141 : vector<32x128xi32>
    %143 = arith.andi %138, %142 : vector<32x128xi1>
    %cst_59 = arith.constant 0.000000e+00 : f32
    %144 = vector.broadcast %cst_59 : f32 to vector<32x128xf32>
    %145 = arith.select %143, %134, %144 : vector<32x128xi1>, vector<32x128xf32>
    %146 = tpu.concatenate %132, %133, %145 in 1 : vector<32x128xf32>, vector<32x128xf32>, vector<32x128xf32> -> vector<32x384xf32>
    %c0_60 = arith.constant 0 : index
    %c0_61 = arith.constant 0 : index
    %147 = vector.load %arg8[%c0_60, %c0_61] : memref<384x128xf32, #tpu.memory_space<vmem>>, vector<384x128xf32>
    %cst_62 = arith.constant dense<0.000000e+00> : vector<32x128xf32>
    %148 = tpu.matmul %146, %147, %cst_62 {dimension_numbers = #tpu.dot_dimension_numbers<[1], [0], [0], [1], [0, 0, 1, 1], [], []>} : vector<32x384xf32>, vector<384x128xf32>, vector<32x128xf32> -> vector<32x128xf32>
    %c0_63 = arith.constant 0 : index
    %c0_64 = arith.constant 0 : index
    %149 = vector.load %arg9[%c0_63, %c0_64] : memref<1x128xf32, #tpu.memory_space<vmem>>, vector<1x128xf32>
    %150 = vector.broadcast %149 : vector<1x128xf32> to vector<32x128xf32>
    %151 = arith.addf %148, %150 : vector<32x128xf32>
    %152 = arith.addf %85, %151 : vector<32x128xf32>
    %c0_65 = arith.constant 0 : index
    %c0_66 = arith.constant 0 : index
    %153 = vector.load %arg10[%c0_65, %c0_66] : memref<32x128xf32, #tpu.memory_space<vmem>>, vector<32x128xf32>
    tpu.vector_store %arg10[%c0_65, %c0_66], %152 {strides = array<i32>} : memref<32x128xf32, #tpu.memory_space<vmem>>, vector<32x128xf32>,
    return
  }
  func.func @transform_0(%arg0: i32) -> (i32, i32) {
    %c0_i32 = arith.constant 0 : i32
    %c0_i32_0 = arith.constant 0 : i32
    %c0_i32_1 = arith.constant 0 : i32
    return %c0_i32, %c0_i32_0 : i32, i32
  }
  func.func @transform_1(%arg0: i32) -> (i32, i32) {
    %c0_i32 = arith.constant 0 : i32
    %c0_i32_0 = arith.constant 0 : i32
    %c0_i32_1 = arith.constant 0 : i32
    return %c0_i32, %c0_i32_0 : i32, i32
  }
  func.func @transform_2(%arg0: i32) -> (i32, i32) {
    %c0_i32 = arith.constant 0 : i32
    %c0_i32_0 = arith.constant 0 : i32
    %c0_i32_1 = arith.constant 0 : i32
    return %c0_i32, %c0_i32_0 : i32, i32
  }
  func.func @transform_3(%arg0: i32) -> (i32, i32) {
    %c0_i32 = arith.constant 0 : i32
    %c0_i32_0 = arith.constant 0 : i32
    %c0_i32_1 = arith.constant 0 : i32
    return %c0_i32, %c0_i32_0 : i32, i32
  }
  func.func @transform_4(%arg0: i32) -> (i32, i32) {
    %c0_i32 = arith.constant 0 : i32
    %c0_i32_0 = arith.constant 0 : i32
    %c0_i32_1 = arith.constant 0 : i32
    return %c0_i32, %c0_i32_0 : i32, i32
  }
  func.func @transform_5(%arg0: i32) -> (i32, i32) {
    %c0_i32 = arith.constant 0 : i32
    %c0_i32_0 = arith.constant 0 : i32
    %c0_i32_1 = arith.constant 0 : i32
    return %c0_i32, %c0_i32_0 : i32, i32
  }
  func.func @transform_6(%arg0: i32) -> (i32, i32) {
    %c0_i32 = arith.constant 0 : i32
    %c0_i32_0 = arith.constant 0 : i32
    %c0_i32_1 = arith.constant 0 : i32
    return %c0_i32, %c0_i32_0 : i32, i32
  }
  func.func @transform_7(%arg0: i32) -> (i32, i32) {
    %c0_i32 = arith.constant 0 : i32
    %c0_i32_0 = arith.constant 0 : i32
    %c0_i32_1 = arith.constant 0 : i32
    return %c0_i32, %c0_i32_0 : i32, i32
  }
  func.func @transform_8(%arg0: i32) -> (i32, i32) {
    %c0_i32 = arith.constant 0 : i32
    %c0_i32_0 = arith.constant 0 : i32
    %c0_i32_1 = arith.constant 0 : i32
    return %c0_i32, %c0_i32_0 : i32, i32
  }
  func.func @transform_9(%arg0: i32) -> (i32, i32) {
    %c0_i32 = arith.constant 0 : i32
    %c0_i32_0 = arith.constant 0 : i32
    %c0_i32_1 = arith.constant 0 : i32
    return %c0_i32, %c0_i32_0 : i32, i32
  }
}

</mosaic_0001>

<bundles_post_ra>
// kernel: tpu_custom_call.1
= control target key start
LH: loop header
LB: loop body
LE: loop exit
PB: predicated region body
PF: predicated region fallthrough
CT: control target
= control target key end

     0   :  { %14 = vsyncpa [#allocation3], 0  ;;  %s2434_s0 = inlined_call_operand.hbm [shape: f32[32,128], index: 0, kind: input, shape index: {}]   ;;  %s2435_s1 = inlined_call_operand.hbm [shape: f32[384,128], index: 1, kind: input, shape index: {}]   ;;  %s2436_s2 = inlined_call_operand.vmem [shape: f32[1,128], index: 2, kind: input, shape index: {}]   ;;  %s2437_s3 = inlined_call_operand.hbm [shape: f32[384,128], index: 3, kind: input, shape index: {}]   ;;  %s2438_s4 = inlined_call_operand.vmem [shape: f32[1,128], index: 4, kind: input, shape index: {}]   ;;  %s2439_s5 = inlined_call_operand.hbm [shape: f32[384,128], index: 5, kind: input, shape index: {}]   ;;  %s2440_s6 = inlined_call_operand.vmem [shape: f32[1,128], index: 6, kind: input, shape index: {}]   ;;  %s2441_s7 = inlined_call_operand.hbm [shape: f32[384,128], index: 7, kind: input, shape index: {}]   ;;  %s2442_s8 = inlined_call_operand.vmem [shape: f32[1,128], index: 8, kind: input, shape index: {}]   ;;  %s2443_s9 = inlined_call_operand.hbm [shape: f32[32,128], index: 9, kind: output, shape index: {}]  }
   0x1   :  { %15 = vsyncpa [#allocation6], 0 }
   0x2   :  { %16 = vsyncpa [#allocation9], 0 }
   0x3   :  { %17 = vsyncpa [#allocation4], 0  ;;  %s2111_s30 = smov [#allocation5]   ;;  %s2112_s11 = smov [#allocation8]  }
   0x4   :  { %s35_s10 = sshll.u32 %s2111_s30, 4  ;;  %s63_s12 = sshll.u32 %s2112_s11, 4  ;;  %s36_s10 = int_to_ptr.vmem [resolvable:$true] %s35_s10  ;;  %s2170_s12 = int_to_ptr.vmem [resolvable:$true] %s63_s12 }
   0x5   :  { %s1971_s15 = scalar_lea.hbm %s2435_s1, 6144 }
   0x6   :  { %p1972_p0 = scmp.ne.s32.totalorder %s2435_s1, %s1971_s15  ;;  %p1975_p1 = scmp.lt.u32.totalorder %s1971_s15, %s2435_s1 }
   0x8   :  { %p1977_p2 = pnand %p1975_p1, %p1972_p0 }
   0xa   :  { %1980 = shalt.err (!%p1977_p2)
}
   0xb   :  { %s1981_s20 = scalar_lea.vmem %s36_s10, 6144  ;;  %p1986_p4 = scmp.lt.s32.totalorder %s36_s10, %s36_s10 }
   0xc   :  { %p1982_p3 = scmp.ne.s32.totalorder %s36_s10, %s1981_s20  ;;  %p1987_p5 = scmp.lt.s32.totalorder %s1981_s20, %s1981_s20 }
   0xe   :  { %p1988_p6 = por %p1987_p5, %p1986_p4 }
  0x10   :  { %p1989_p7 = pnand %p1988_p6, %p1982_p3 }
  0x12   :  { %1992 = shalt.err (!%p1989_p7)
}
  0x13   :  { %s2113_s21 = smov 128   ;;  %s2114_s22 = smov 8  }
  0x14   :  { %41 = dma.hbm_to_vmem [thread:$0]  %s2435_s1, 6144, %s36_s10, [#allocation6], %s2113_s21, %s2113_s21, %s2114_s22  }
  0x15   :  { %s1993_s27 = scalar_lea.hbm %s2439_s5, 6144 }
  0x16   :  { %p1994_p8 = scmp.ne.s32.totalorder %s2439_s5, %s1993_s27  ;;  %p1997_p9 = scmp.lt.u32.totalorder %s1993_s27, %s2439_s5 }
  0x18   :  { %p1999_p10 = pnand %p1997_p9, %p1994_p8 }
  0x1a   :  { %2002 = shalt.err (!%p1999_p10)
}
  0x1b   :  { %s2003_s13 = scalar_lea.vmem %s2170_s12, 6144  ;;  %p2008_p12 = scmp.lt.s32.totalorder %s2170_s12, %s2170_s12 }
  0x1c   :  { %p2004_p11 = scmp.ne.s32.totalorder %s2170_s12, %s2003_s13  ;;  %p2009_p13 = scmp.lt.s32.totalorder %s2003_s13, %s2003_s13 }
  0x1e   :  { %p2010_p0 = por %p2009_p13, %p2008_p12 }
  0x20   :  { %p2011_p1 = pnand %p2010_p0, %p2004_p11 }
  0x22   :  { %2014 = shalt.err (!%p2011_p1)
}
  0x23   :  { %69 = dma.hbm_to_vmem [thread:$0]  %s2439_s5, 6144, %s2170_s12, [#allocation9], %s2113_s21, %s2113_s21, %s2114_s22  }
  0x24   :  { %s2115_s14 = smov [#allocation2]   ;;  %s2116_s16 = smov [#allocation7]  }
  0x25   :  { %s23_s15 = sshll.u32 %s2115_s14, 4  ;;  %s49_s17 = sshll.u32 %s2116_s16, 4  ;;  %s24_s15 = int_to_ptr.vmem [resolvable:$true] %s23_s15  ;;  %s2207_s17 = int_to_ptr.vmem [resolvable:$true] %s49_s17 }
  0x26   :  { %s2015_s20 = scalar_lea.hbm %s2434_s0, 512 }
  0x27   :  { %p2016_p2 = scmp.ne.s32.totalorder %s2434_s0, %s2015_s20  ;;  %p2019_p3 = scmp.lt.u32.totalorder %s2015_s20, %s2434_s0 }
  0x29   :  { %p2021_p4 = pnand %p2019_p3, %p2016_p2 }
  0x2b   :  { %2024 = shalt.err (!%p2021_p4)
}
  0x2c   :  { %s2025_s5 = scalar_lea.vmem %s24_s15, 512  ;;  %p2030_p6 = scmp.lt.s32.totalorder %s24_s15, %s24_s15 }
  0x2d   :  { %p2026_p5 = scmp.ne.s32.totalorder %s24_s15, %s2025_s5  ;;  %p2031_p7 = scmp.lt.s32.totalorder %s2025_s5, %s2025_s5 }
  0x2f   :  { %p2032_p8 = por %p2031_p7, %p2030_p6 }
  0x31   :  { %p2033_p9 = pnand %p2032_p8, %p2026_p5 }
  0x33   :  { %2036 = shalt.err (!%p2033_p9)
}
  0x34   :  { %29 = dma.hbm_to_vmem [thread:$0]  %s2434_s0, 512, %s24_s15, [#allocation3], %s2113_s21, %s2113_s21, %s2114_s22  }
  0x35   :  { %s2037_s30 = scalar_lea.hbm %s2437_s3, 6144 }
  0x36   :  { %p2038_p10 = scmp.ne.s32.totalorder %s2437_s3, %s2037_s30  ;;  %p2041_p11 = scmp.lt.u32.totalorder %s2037_s30, %s2437_s3 }
  0x38   :  { %p2043_p12 = pnand %p2041_p11, %p2038_p10 }
  0x3a   :  { %2046 = shalt.err (!%p2043_p12)
}
  0x3b   :  { %s2047_s14 = scalar_lea.vmem %s2207_s17, 6144  ;;  %p2052_p0 = scmp.lt.s32.totalorder %s2207_s17, %s2207_s17 }
  0x3c   :  { %p2048_p13 = scmp.ne.s32.totalorder %s2207_s17, %s2047_s14  ;;  %p2053_p1 = scmp.lt.s32.totalorder %s2047_s14, %s2047_s14 }
  0x3e   :  { %p2054_p2 = por %p2053_p1, %p2052_p0 }
  0x40   :  { %p2055_p3 = pnand %p2054_p2, %p2048_p13 }
  0x42   :  { %2058 = shalt.err (!%p2055_p3)
}
  0x43   :  { %55 = dma.hbm_to_vmem [thread:$0]  %s2437_s3, 6144, %s2207_s17, [#allocation6], %s2113_s21, %s2113_s21, %s2114_s22  }
  0x44   :  { %s2117_s16 = smov [#allocation10]   ;;  %s2059_s23 = scalar_lea.hbm %s2441_s7, 6144 }
  0x45   :  { %s77_s18 = sshll.u32 %s2117_s16, 4  ;;  %p2060_p4 = scmp.ne.s32.totalorder %s2441_s7, %s2059_s23  ;;  %s78_s18 = int_to_ptr.vmem [resolvable:$true] %s77_s18 }
  0x46   :  { %p2063_p5 = scmp.lt.u32.totalorder %s2059_s23, %s2441_s7 }
  0x48   :  { %p2065_p6 = pnand %p2063_p5, %p2060_p4 }
  0x4a   :  { %2068 = shalt.err (!%p2065_p6)
}
  0x4b   :  { %s2069_s12 = scalar_lea.vmem %s78_s18, 6144  ;;  %p2074_p8 = scmp.lt.s32.totalorder %s78_s18, %s78_s18 }
  0x4c   :  { %p2070_p7 = scmp.ne.s32.totalorder %s78_s18, %s2069_s12  ;;  %p2075_p9 = scmp.lt.s32.totalorder %s2069_s12, %s2069_s12 }
  0x4e   :  { %p2076_p10 = por %p2075_p9, %p2074_p8 }
  0x50   :  { %p2077_p11 = pnand %p2076_p10, %p2070_p7 }
  0x52   :  { %2080 = shalt.err (!%p2077_p11)
}
  0x53   :  { %83 = dma.hbm_to_vmem [thread:$0]  %s2441_s7, 6144, %s78_s18, [#allocation9], %s2113_s21, %s2113_s21, %s2114_s22  }
  0x54   :  { %2103 = dma.done.wait [#allocation3], 512  }
  0x55   :  { %2104 = vsyncadd [#allocation3], 4294966784 }
  0x56   :  { %2105 = dma.done.wait [#allocation6], 12288  }
  0x57   :  { %2106 = vsyncadd [#allocation6], 4294955008 }
  0x58   :  { %2107 = dma.done.wait [#allocation9], 12288  }
  0x59   :  { %2108 = vsyncadd [#allocation9], 4294955008  ;;  %v247_v0 = vld [vmem:[#allocation5 + $0x80] sm:$0xff]  ;;  %v248_v1 = vld [vmem:[#allocation5 + $0x88] sm:$0xff]  ;;  %v101_v50 = vlaneseq  ;;  %vm213_vm0 = vcmask 1046528   ;;  %vm179_vm1 = vcmask 1040384  }
  0x5a   :  { %v231_v2 = vld [vmem:[#allocation5] sm:$0xff]  ;;  %v1706_v3 = vpack.c.bf16 %v248_v1, %v247_v0  ;;  %v232_v4 = vld [vmem:[#allocation5 + $0x8] sm:$0xff]  ;;  %v249_v5 = vld [vmem:[#allocation5 + $0x90] sm:$0xff] }
  0x5b   :  { %v250_v6 = vld [vmem:[#allocation5 + $0x98] sm:$0xff]  ;;  %v1708_v7 = vpack.c.bf16 %v232_v4, %v231_v2  ;;  %v263_v9 = vld [vmem:[#allocation5 + $0x100] sm:$0xff]  ;;  %v264_v10 = vld [vmem:[#allocation5 + $0x108] sm:$0xff]  ;;  %v102_v0 = vshrl.u32 %v101_v50, 7 }
  0x5c   :  { %v1710_v8 = vpack.c.bf16 %v250_v6, %v249_v5  ;;  %v233_v11 = vld [vmem:[#allocation5 + $0x10] sm:$0xff]  ;;  %1707 = vmatprep.subr.bf16.mxu0 %v1706_v3  ;;  %v1738_v12 = vpack.c.bf16 %v264_v10, %v263_v9  ;;  %v234_v13 = vld [vmem:[#allocation5 + $0x18] sm:$0xff]  ;;  %v251_v14 = vld [vmem:[#allocation5 + $0xa0] sm:$0xff] }
  0x5d   :  { %v252_v15 = vld [vmem:[#allocation5 + $0xa8] sm:$0xff]  ;;  %1709 = vmatpush3.bf16.msra.mxu0 %v1708_v7  ;;  %v1712_v16 = vpack.c.bf16 %v234_v13, %v233_v11  ;;  %v265_v17 = vld [vmem:[#allocation5 + $0x110] sm:$0xff]  ;;  %v266_v18 = vld [vmem:[#allocation5 + $0x118] sm:$0xff]  ;;  %v103_v6 = vadd.s32 8, %v102_v0  ;;  %v110_v9 = vand.u32 15, %v102_v0 }
  0x5e   :  { %1711 = vmatprep.subr.bf16.mxu0 %v1710_v8  ;;  %1739 = vmatprep.subr.bf16.mxu1 %v1738_v12  ;;  %v1714_v19 = vpack.c.bf16 %v252_v15, %v251_v14  ;;  %v1742_v20 = vpack.c.bf16 %v266_v18, %v265_v17  ;;  %v235_v21 = vld [vmem:[#allocation5 + $0x20] sm:$0xff]  ;;  %v236_v22 = vld [vmem:[#allocation5 + $0x28] sm:$0xff]  ;;  %v253_v23 = vld [vmem:[#allocation5 + $0xb0] sm:$0xff] }
  0x5f   :  { %1741 = vmatpush3.bf16.msra.mxu1 %v1738_v12  ;;  %v254_v24 = vld [vmem:[#allocation5 + $0xb8] sm:$0xff]  ;;  %v267_v25 = vld [vmem:[#allocation5 + $0x120] sm:$0xff]  ;;  %v268_v26 = vld [vmem:[#allocation5 + $0x128] sm:$0xff]  ;;  %v1716_v28 = vpack.c.bf16 %v236_v22, %v235_v21  ;;  %v117_v15 = vand.u32 15, %v103_v6  ;;  %v104_v21 = vadd.s32 16, %v102_v0 }
  0x60   :  { %1743 = vmatprep.subr.bf16.mxu1 %v1742_v20  ;;  %v1746_v27 = vpack.c.bf16 %v268_v26, %v267_v25  ;;  %v269_v29 = vld [vmem:[#allocation5 + $0x130] sm:$0xff]  ;;  %v270_v30 = vld [vmem:[#allocation5 + $0x138] sm:$0xff]  ;;  %v1718_v31 = vpack.c.bf16 %v254_v24, %v253_v23  ;;  %v255_v34 = vld [vmem:[#allocation5 + $0xc0] sm:$0xff]  ;;  %v2272_v24 = vadd.s32 4294967295, %v110_v9  ;;  %v2118_v25 = vmov 0.0  }
  0x61   :  { %1713 = vmatpush3.bf16.msra.mxu0 %v1712_v16  ;;  %v237_v32 = vld [vmem:[#allocation5 + $0x30] sm:$0xff]  ;;  %v238_v33 = vld [vmem:[#allocation5 + $0x38] sm:$0xff]  ;;  %v256_v35 = vld [vmem:[#allocation5 + $0xc8] sm:$0xff]  ;;  %v1750_v36 = vpack.c.bf16 %v270_v30, %v269_v29  ;;  %v105_v16 = vadd.s32 24, %v102_v0  ;;  %v2274_v26 = vrot.slane %v2118_v25, 7 }
  0x62   :  { %1715 = vmatprep.subr.bf16.mxu0 %v1714_v19  ;;  %v1720_v37 = vpack.c.bf16 %v238_v33, %v237_v32  ;;  %v271_v38 = vld [vmem:[#allocation5 + $0x140] sm:$0xff]  ;;  %v272_v39 = vld [vmem:[#allocation5 + $0x148] sm:$0xff]  ;;  %v1722_v40 = vpack.c.bf16 %v256_v35, %v255_v34  ;;  %v257_v43 = vld [vmem:[#allocation5 + $0xd0] sm:$0xff]  ;;  %v2278_v33 = vadd.s32 1, %v117_v15  ;;  %vm162_vm2 = vcmp.ge.s32.totalorder %v2272_v24, 0 }
  0x63   :  { %1745 = vmatpush3.bf16.msra.mxu1 %v1742_v20  ;;  %v239_v41 = vld [vmem:[#allocation5 + $0x40] sm:$0xff]  ;;  %v240_v42 = vld [vmem:[#allocation5 + $0x48] sm:$0xff]  ;;  %v258_v44 = vld [vmem:[#allocation5 + $0xd8] sm:$0xff]  ;;  %v1754_v45 = vpack.c.bf16 %v272_v39, %v271_v38  ;;  %v131_v35 = vand.u32 15, %v105_v16  ;;  %v124_v38 = vand.u32 15, %v104_v21 }
  0x64   :  { %1747 = vmatprep.subr.bf16.mxu1 %v1746_v27  ;;  %v2259_v46 = vld [vmem:[#allocation2] sm:$0xff]  ;;  %v1724_v47 = vpack.c.bf16 %v240_v42, %v239_v41  ;;  %v273_v48 = vld [vmem:[#allocation5 + $0x150] sm:$0xff]  ;;  %v274_v49 = vld [vmem:[#allocation5 + $0x158] sm:$0xff]  ;;  %v1726_v53 = vpack.c.bf16 %v258_v44, %v257_v43  ;;  %vm206_vm3 = vcmp.lt.s32.totalorder %v2278_v33, 16 }
  0x65   :  { %1717 = vmatpush3.bf16.msra.mxu0 %v1716_v28  ;;  %350 = vmatprep.mubr.f32.mxu0 %v2259_v46  ;;  %v2262_v51 = vld [vmem:[#allocation2 + $0x8] sm:$0xff]  ;;  %v214_v52 = vrot.slane %v2259_v46, 1  ;;  %v241_v54 = vld [vmem:[#allocation5 + $0x50] sm:$0xff]  ;;  %v242_v55 = vld [vmem:[#allocation5 + $0x58] sm:$0xff]  ;;  %v1758_v59 = vpack.c.bf16 %v274_v49, %v273_v48  ;;  %v181_v23 = vrot.slane %v2259_v46, 7 }
  0x66   :  { %1719 = vmatprep.subr.bf16.mxu0 %v1718_v31  ;;  %v215_v56 = vrot.slane %v2262_v51, 1  ;;  %v259_v57 = vld [vmem:[#allocation5 + $0xe0] sm:$0xff]  ;;  %v260_v58 = vld [vmem:[#allocation5 + $0xe8] sm:$0xff]  ;;  %v1728_v61 = vpack.c.bf16 %v242_v55, %v241_v54  ;;  %v261_v4 = vld [vmem:[#allocation5 + $0xf0] sm:$0xff]  ;;  %v183_v42 = vrot.slane %v2262_v51, 7 }
  0x67   :  { %1749 = vmatpush3.bf16.msra.mxu1 %v1746_v27  ;;  %v275_v62 = vld [vmem:[#allocation5 + $0x160] sm:$0xff]  ;;  %v276_v63 = vld [vmem:[#allocation5 + $0x168] sm:$0xff]  ;;  %v1730_v1 = vpack.c.bf16 %v260_v58, %v259_v57  ;;  %v262_v5 = vld [vmem:[#allocation5 + $0xf8] sm:$0xff]  ;;  %v182_v41 = vsel %vm179_vm1, %v2274_v26, %v181_v23 }
  0x68   :  { %1751 = vmatprep.subr.bf16.mxu1 %v1750_v36  ;;  %v216_v60 = vsel %vm213_vm0, %v214_v52, %v215_v56  ;;  %v243_v2 = vld [vmem:[#allocation5 + $0x60] sm:$0xff]  ;;  %v244_v3 = vld [vmem:[#allocation5 + $0x68] sm:$0xff]  ;;  %v1762_v7 = vpack.c.bf16 %v276_v63, %v275_v62  ;;  %v277_v10 = vld [vmem:[#allocation5 + $0x170] sm:$0xff]  ;;  %v1734_v12 = vpack.c.bf16 %v262_v5, %v261_v4  ;;  %v2290_v52 = vadd.s32 1, %v131_v35 }
  0x69   :  { %1721 = vmatpush3.bf16.msra.mxu0 %v1720_v37  ;;  %1586 = vmatprep.mubr.f32.mxu1 %v216_v60  ;;  %v1732_v8 = vpack.c.bf16 %v244_v3, %v243_v2  ;;  %v278_v11 = vld [vmem:[#allocation5 + $0x178] sm:$0xff]  ;;  %v245_v13 = vld [vmem:[#allocation5 + $0x70] sm:$0xff]  ;;  %v512_v17 = vld [vmem:[#allocation7 + $0x80] sm:$0xff]  ;;  %v2299_v60 = vadd.s32 4294967295, %v124_v38 }
  0x6a   :  { %1723 = vmatprep.subr.bf16.mxu0 %v1722_v40  ;;  %v246_v14 = vld [vmem:[#allocation5 + $0x78] sm:$0xff]  ;;  %v513_v18 = vld [vmem:[#allocation7 + $0x88] sm:$0xff]  ;;  %v1766_v19 = vpack.c.bf16 %v278_v11, %v277_v10  ;;  %v2269_v20 = vld [vmem:[#allocation2 + $0x10] sm:$0xff]  ;;  %vm208_vm4 = vcmp.lt.s32.totalorder %v2290_v52, 16 }
  0x6b   :  { %1753 = vmatpush3.bf16.msra.mxu1 %v1750_v36  ;;  %v1736_v22 = vpack.c.bf16 %v246_v14, %v245_v13  ;;  %v2276_v27 = vld [vmem:[#allocation2 + $0x18] sm:$0xff]  ;;  %v528_v28 = vld [vmem:[#allocation7 + $0x100] sm:$0xff]  ;;  %v529_v29 = vld [vmem:[#allocation7 + $0x108] sm:$0xff]  ;;  %v1770_v30 = vpack.c.bf16 %v513_v18, %v512_v17  ;;  %v217_v34 = vrot.slane %v2269_v20, 1  ;;  %vm164_vm5 = vcmp.ge.s32.totalorder %v2299_v60, 0 }
  0x6c   :  { %1755 = vmatprep.subr.bf16.mxu1 %v1754_v45  ;;  %v496_v31 = vld [vmem:[#allocation7] sm:$0xff]  ;;  %v497_v32 = vld [vmem:[#allocation7 + $0x8] sm:$0xff]  ;;  %v514_v36 = vld [vmem:[#allocation7 + $0x90] sm:$0xff]  ;;  %v219_v39 = vrot.slane %v2276_v27, 1  ;;  %v1802_v40 = vpack.c.bf16 %v529_v29, %v528_v28 }
  0x6d   :  { %1725 = vmatpush3.bf16.msra.mxu0 %v1724_v47  ;;  %v515_v37 = vld [vmem:[#allocation7 + $0x98] sm:$0xff]  ;;  %v1772_v43 = vpack.c.bf16 %v497_v32, %v496_v31  ;;  %v530_v44 = vld [vmem:[#allocation7 + $0x110] sm:$0xff]  ;;  %v218_v50 = vsel %vm213_vm0, %v215_v56, %v217_v34  ;;  %v516_v54 = vld [vmem:[#allocation7 + $0xa0] sm:$0xff]  ;;  %v185_v56 = vrot.slane %v2269_v20, 7 }
  0x6e   :  { %1727 = vmatprep.subr.bf16.mxu0 %v1726_v53  ;;  %v1774_v47 = vpack.c.bf16 %v515_v37, %v514_v36  ;;  %v498_v48 = vld [vmem:[#allocation7 + $0x10] sm:$0xff]  ;;  %v499_v49 = vld [vmem:[#allocation7 + $0x18] sm:$0xff]  ;;  %v2292_v53 = vrot.slane %v2118_v25, 1  ;;  %v517_v55 = vld [vmem:[#allocation7 + $0xa8] sm:$0xff]  ;;  %v220_v57 = vsel %vm213_vm0, %v217_v34, %v219_v39 }
  0x6f   :  { %1757 = vmatpush3.bf16.msra.mxu1 %v1754_v45  ;;  %v531_v45 = vld [vmem:[#allocation7 + $0x118] sm:$0xff]  ;;  %v532_v62 = vld [vmem:[#allocation7 + $0x120] sm:$0xff]  ;;  %v533_v63 = vld [vmem:[#allocation7 + $0x128] sm:$0xff]  ;;  %v1778_v0 = vpack.c.bf16 %v517_v55, %v516_v54 }
  0x70   :  { %1759 = vmatprep.subr.bf16.mxu1 %v1758_v59  ;;  %v1806_v58 = vpack.c.bf16 %v531_v45, %v530_v44  ;;  %v501_v2 = vld [vmem:[#allocation7 + $0x28] sm:$0xff]  ;;  %v222_v3 = vsel %vm213_vm0, %v219_v39, %v2292_v53  ;;  %v518_v4 = vld [vmem:[#allocation7 + $0xb0] sm:$0xff]  ;;  %v519_v5 = vld [vmem:[#allocation7 + $0xb8] sm:$0xff]  ;;  %v1810_v6 = vpack.c.bf16 %v533_v63, %v532_v62 }
  0x71   :  { %1729 = vmatpush3.bf16.msra.mxu0 %v1728_v61  ;;  %v1776_v61 = vpack.c.bf16 %v499_v49, %v498_v48  ;;  %v1782_v10 = vpack.c.bf16 %v519_v5, %v518_v4  ;;  %v502_v11 = vld [vmem:[#allocation7 + $0x30] sm:$0xff]  ;;  %v520_v13 = vld [vmem:[#allocation7 + $0xc0] sm:$0xff]  ;;  %v521_v14 = vld [vmem:[#allocation7 + $0xc8] sm:$0xff] }
  0x72   :  { %1731 = vmatprep.subr.bf16.mxu0 %v1730_v1  ;;  %v500_v1 = vld [vmem:[#allocation7 + $0x20] sm:$0xff]  ;;  %v1786_v17 = vpack.c.bf16 %v521_v14, %v520_v13  ;;  %v534_v25 = vld [vmem:[#allocation7 + $0x130] sm:$0xff]  ;;  %v535_v29 = vld [vmem:[#allocation7 + $0x138] sm:$0xff] }
  0x73   :  { %1761 = vmatpush3.bf16.msra.mxu1 %v1758_v59  ;;  %v184_v59 = vsel %vm179_vm1, %v181_v23, %v183_v42  ;;  %v1780_v9 = vpack.c.bf16 %v501_v2, %v500_v1  ;;  %v504_v18 = vld [vmem:[#allocation7 + $0x40] sm:$0xff]  ;;  %v523_v23 = vld [vmem:[#allocation7 + $0xd8] sm:$0xff]  ;;  %v1814_v32 = vpack.c.bf16 %v535_v29, %v534_v25  ;;  %v525_v36 = vld [vmem:[#allocation7 + $0xe8] sm:$0xff] }
  0x74   :  { %1763 = vmatprep.subr.bf16.mxu1 %v1762_v7  ;;  %v507_v31 = vld [vmem:[#allocation7 + $0x58] sm:$0xff]  ;;  %v524_v35 = vld [vmem:[#allocation7 + $0xe0] sm:$0xff]  ;;  %v537_v39 = vld [vmem:[#allocation7 + $0x148] sm:$0xff] }
  0x75   :  { %1733 = vmatpush3.bf16.msra.mxu0 %v1732_v8  ;;  %v187_v8 = vrot.slane %v2276_v27, 7  ;;  %v536_v37 = vld [vmem:[#allocation7 + $0x140] sm:$0xff]  ;;  %v1794_v38 = vpack.c.bf16 %v525_v36, %v524_v35  ;;  %v526_v44 = vld [vmem:[#allocation7 + $0xf0] sm:$0xff]  ;;  %v527_v45 = vld [vmem:[#allocation7 + $0xf8] sm:$0xff] }
  0x76   :  { %1735 = vmatprep.subr.bf16.mxu0 %v1734_v12  ;;  %v503_v12 = vld [vmem:[#allocation7 + $0x38] sm:$0xff]  ;;  %v1798_v48 = vpack.c.bf16 %v527_v45, %v526_v44  ;;  %v778_v1 = vld [vmem:[#allocation8 + $0x88] sm:$0xff]  ;;  %v763_v36 = vld [vmem:[#allocation8 + $0x10] sm:$0xff] }
  0x77   :  { %1765 = vmatpush3.bf16.msra.mxu1 %v1762_v7  ;;  %v186_v7 = vsel %vm179_vm1, %v183_v42, %v185_v56  ;;  %v188_v15 = vsel %vm179_vm1, %v185_v56, %v187_v8  ;;  %v1784_v16 = vpack.c.bf16 %v503_v12, %v502_v11  ;;  %v509_v42 = vld [vmem:[#allocation7 + $0x68] sm:$0xff]  ;;  %v539_v49 = vld [vmem:[#allocation7 + $0x158] sm:$0xff]  ;;  %v1278_v8 = vld [vmem:[%s2436_s2] ss:$0 sm:$0xff] }
  0x78   :  { %1767 = vmatprep.subr.bf16.mxu1 %v1766_v19  ;;  %v511_v54 = vld [vmem:[#allocation7 + $0x78] sm:$0xff]  ;;  %v794_v4 = vld [vmem:[#allocation8 + $0x108] sm:$0xff] }
  0x79   :  { %1737 = vmatpush3.bf16.msra.mxu0 %v1736_v22  ;;  %v522_v22 = vld [vmem:[#allocation7 + $0xd0] sm:$0xff]  ;;  %v543_v62 = vld [vmem:[#allocation7 + $0x178] sm:$0xff]  ;;  %v782_v44 = vld [vmem:[#allocation8 + $0xa8] sm:$0xff] }
  0x7a   :  { %1771 = vmatprep.subr.bf16.mxu0 %v1770_v30  ;;  %v1790_v28 = vpack.c.bf16 %v523_v23, %v522_v22  ;;  %v506_v30 = vld [vmem:[#allocation7 + $0x50] sm:$0xff]  ;;  %v780_v29 = vld [vmem:[#allocation8 + $0x98] sm:$0xff] }
  0x7b   :  { %1769 = vmatpush3.bf16.msra.mxu1 %v1766_v19  ;;  %v505_v19 = vld [vmem:[#allocation7 + $0x48] sm:$0xff]  ;;  %v1792_v34 = vpack.c.bf16 %v507_v31, %v506_v30 }
  0x7c   :  { %1279 = vmatmul.mubr.msk.f32.vlgmr.msra.gmra.mrb[0].mxu0 %vm162_vm2, %v182_v41  ;;  %1803 = vmatprep.subr.bf16.mxu1 %v1802_v40  ;;  %v1788_v21 = vpack.c.bf16 %v505_v19, %v504_v18  ;;  %v1818_v41 = vpack.c.bf16 %v537_v39, %v536_v37  ;;  %v761_v19 = vld [vmem:[#allocation8] sm:$0xff]  ;;  %v764_v37 = vld [vmem:[#allocation8 + $0x18] sm:$0xff] }
  0x7d   :  { %355 = vmatprep.mubr.f32.mxu0 %v2262_v51  ;;  %1773 = vmatpush3.bf16.msra.mxu0 %v1772_v43 }
  0x7e   :  { %1587 = vmatmul.mubr.msk.f32.vlgmr.msra.gmra.mrb[0].mxu1 %vm206_vm3, %v218_v50  ;;  %1775 = vmatprep.subr.bf16.mxu0 %v1774_v47  ;;  %v538_v47 = vld [vmem:[#allocation7 + $0x150] sm:$0xff] }
  0x7f   :  { %1589 = vmatprep.mubr.f32.mxu1 %v220_v57  ;;  %1805 = vmatpush3.bf16.msra.mxu1 %v1802_v40  ;;  %v508_v40 = vld [vmem:[#allocation7 + $0x60] sm:$0xff]  ;;  %v510_v50 = vld [vmem:[#allocation7 + $0x70] sm:$0xff]  ;;  %v1822_v55 = vpack.c.bf16 %v539_v49, %v538_v47 }
  0x80   :  { %356 = vmatmul.mubr.f32.gmra.mrb[2].mxu0 %v184_v59  ;;  %1807 = vmatprep.subr.bf16.mxu1 %v1806_v58  ;;  %v1796_v43 = vpack.c.bf16 %v509_v42, %v508_v40  ;;  %v1800_v57 = vpack.c.bf16 %v511_v54, %v510_v50  ;;  %v541_v59 = vld [vmem:[#allocation7 + $0x168] sm:$0xff] }
  0x81   :  { %360 = vmatprep.mubr.f32.mxu0 %v2269_v20  ;;  %1777 = vmatpush3.bf16.msra.mxu0 %v1776_v61  ;;  %v542_v61 = vld [vmem:[#allocation7 + $0x170] sm:$0xff] }
  0x82   :  { %1590 = vmatmul.mubr.msk.f32.gmra.mrb[2].mxu1 %vm208_vm4, %v222_v3  ;;  %1779 = vmatprep.subr.bf16.mxu0 %v1778_v0  ;;  %v1830_v63 = vpack.c.bf16 %v543_v62, %v542_v61  ;;  %v777_v0 = vld [vmem:[#allocation8 + $0x80] sm:$0xff] }
  0x83   :  { %1809 = vmatpush3.bf16.msra.mxu1 %v1806_v58  ;;  %v540_v58 = vld [vmem:[#allocation7 + $0x160] sm:$0xff]  ;;  %v1834_v2 = vpack.c.bf16 %v778_v1, %v777_v0  ;;  %v795_v0 = vld [vmem:[#allocation8 + $0x110] sm:$0xff]  ;;  %v796_v1 = vld [vmem:[#allocation8 + $0x118] sm:$0xff] }
  0x84   :  { %1280 = vmatmul.mubr.msk.f32.gmra.mrb[4].mxu0 %vm164_vm5, %v186_v7  ;;  %1811 = vmatprep.subr.bf16.mxu1 %v1810_v6  ;;  %v1826_v56 = vpack.c.bf16 %v541_v59, %v540_v58  ;;  %v793_v3 = vld [vmem:[#allocation8 + $0x100] sm:$0xff] }
  0x85   :  { %365 = vmatprep.mubr.f32.mxu0 %v2276_v27  ;;  %1781 = vmatpush3.bf16.msra.mxu0 %v1780_v9  ;;  %v2317_v5 = vpack.c.bf16 %v794_v4, %v793_v3  ;;  %v765_v58 = vld [vmem:[#allocation8 + $0x20] sm:$0xff]  ;;  %v784_v3 = vld [vmem:[#allocation8 + $0xb8] sm:$0xff] }
  0x86   :  { %1783 = vmatprep.subr.bf16.mxu0 %v1782_v10 }
  0x87   :  { %1813 = vmatpush3.bf16.msra.mxu1 %v1810_v6 }
  0x88   :  { %366 = vmatmul.mubr.f32.gmra.mrb[6].mxu0 %v188_v15  ;;  %1815 = vmatprep.subr.bf16.mxu1 %v1814_v32 }
  0x89   :  { %1785 = vmatpush3.bf16.msra.mxu0 %v1784_v16 }
  0x8a   :  { %1787 = vmatprep.subr.bf16.mxu0 %v1786_v17 }
  0x8b   :  { %1817 = vmatpush3.bf16.msra.mxu1 %v1814_v32 }
  0x8c   :  { %1819 = vmatprep.subr.bf16.mxu1 %v1818_v41 }
  0x8d   :  { %1789 = vmatpush3.bf16.msra.mxu0 %v1788_v21  ;;  %v762_v21 = vld [vmem:[#allocation8 + $0x8] sm:$0xff] }
  0x8e   :  { %1791 = vmatprep.subr.bf16.mxu0 %v1790_v28  ;;  %v779_v28 = vld [vmem:[#allocation8 + $0x90] sm:$0xff]  ;;  %v1836_v35 = vpack.c.bf16 %v762_v21, %v761_v19 }
  0x8f   :  { %1821 = vmatpush3.bf16.msra.mxu1 %v1818_v41 }
  0x90   :  { %1823 = vmatprep.subr.bf16.mxu1 %v1822_v55 }
  0x91   :  { %1793 = vmatpush3.bf16.msra.mxu0 %v1792_v34 }
  0x92   :  { %1795 = vmatprep.subr.bf16.mxu0 %v1794_v38  ;;  %v1838_v38 = vpack.c.bf16 %v780_v29, %v779_v28  ;;  %v786_v29 = vld [vmem:[#allocation8 + $0xc8] sm:$0xff] }
  0x93   :  { %1825 = vmatpush3.bf16.msra.mxu1 %v1822_v55 }
  0x94   :  { %1827 = vmatprep.subr.bf16.mxu1 %v1826_v56 }
  0x95   :  { %1797 = vmatpush3.bf16.msra.mxu0 %v1796_v43  ;;  %v781_v43 = vld [vmem:[#allocation8 + $0xa0] sm:$0xff] }
  0x96   :  { %1799 = vmatprep.subr.bf16.mxu0 %v1798_v48  ;;  %v1840_v48 = vpack.c.bf16 %v764_v37, %v763_v36  ;;  %v800_v36 = vld [vmem:[#allocation8 + $0x138] sm:$0xff] }
  0x97   :  { %1829 = vmatpush3.bf16.msra.mxu1 %v1826_v56 }
  0x98   :  { %1831 = vmatprep.subr.bf16.mxu1 %v1830_v63 }
  0x99   :  { %1801 = vmatpush3.bf16.msra.mxu0 %v1800_v57  ;;  %v1842_v57 = vpack.c.bf16 %v782_v44, %v781_v43  ;;  %v801_v43 = vld [vmem:[#allocation8 + $0x140] sm:$0xff] }
  0x9a   :  { %1835 = vmatprep.subr.bf16.mxu0 %v1834_v2  ;;  %v783_v2 = vld [vmem:[#allocation8 + $0xb0] sm:$0xff] }
  0x9b   :  { %1833 = vmatpush3.bf16.msra.mxu1 %v1830_v63  ;;  %v766_v63 = vld [vmem:[#allocation8 + $0x28] sm:$0xff] }
  0x9c   :  { %1867 = vmatprep.subr.bf16.mxu1 %v2317_v5 }
 0x14f   :  { %v1330_v6 = vpop.f32.mrb[0].mxu0 }
 0x150   :  { %v1331_v7 = vpop.f32.mrb[1].mxu0 }
 0x151   :  { %v1332_v9 = vadd.f32 %v1331_v7, %v1330_v6  ;;  %v1588_v10 = vpop.f32.mrb[0].mxu1 }
 0x152   :  { %v437_v11 = vpop.f32.mrb[1].mxu1 }
 0x153   :  { %v1333_v12 = vpop.f32.mrb[2].mxu0  ;;  %v353_v13 = vadd.f32 %v1332_v9, %v1278_v8  ;;  %v1844_v9 = vpack.c.bf16 %v766_v63, %v765_v58 }
 0x154   :  { %v1334_v14 = vpop.f32.mrb[3].mxu0 }
 0x155   :  { %v1335_v15 = vadd.f32 %v1334_v14, %v1333_v12  ;;  %v438_v16 = vadd.f32 %v437_v11, %v353_v13  ;;  %v1591_v17 = vpop.f32.mrb[2].mxu1  ;;  %v1846_v13 = vpack.c.bf16 %v784_v3, %v783_v2  ;;  %v767_v14 = vld [vmem:[#allocation8 + $0x30] sm:$0xff]  ;;  %v805_v2 = vld [vmem:[#allocation8 + $0x160] sm:$0xff] }
 0x156   :  { %v447_v18 = vpop.f32.mrb[3].mxu1 }
 0x157   :  { %v358_v22 = vadd.f32 %v1335_v15, %v1278_v8  ;;  %v456_v23 = vmax.f32 %v438_v16, 0.0  ;;  %v1336_v25 = vpop.f32.mrb[4].mxu0  ;;  %v768_v15 = vld [vmem:[#allocation8 + $0x38] sm:$0xff]  ;;  %v797_v16 = vld [vmem:[#allocation8 + $0x120] sm:$0xff] }
 0x158   :  { %v1337_v30 = vpop.f32.mrb[5].mxu0  ;;  %v1848_v21 = vpack.c.bf16 %v768_v15, %v767_v14  ;;  %v1059_v14 = vld [vmem:[#allocation10 + $0x108] sm:$0xff] }
 0x159   :  { %v464_v31 = vrot.slane %v456_v23, 7  ;;  %v1338_v32 = vadd.f32 %v1337_v30, %v1336_v25  ;;  %615 = vmatprep.mubr.f32.mxu0 %v456_v23  ;;  %v443_v34 = vadd.f32 %v1588_v10, %v358_v22  ;;  %v480_v45 = vrot.slane %v456_v23, 1 }
 0x15b   :  { %v1339_v39 = vpop.f32.mrb[6].mxu0  ;;  %v363_v40 = vadd.f32 %v1338_v32, %v1278_v8  ;;  %v465_v41 = vsel %vm179_vm1, %v2274_v26, %v464_v31  ;;  %v457_v42 = vmax.f32 %v443_v34, 0.0  ;;  %v770_v32 = vld [vmem:[#allocation8 + $0x48] sm:$0xff]  ;;  %v799_v34 = vld [vmem:[#allocation8 + $0x130] sm:$0xff] }
 0x15c   :  { %v1340_v47 = vpop.f32.mrb[7].mxu0  ;;  %1284 = vmatmul.mubr.msk.f32.vlgmr.msra.gmra.mrb[8].mxu0 %vm162_vm2, %v465_v41  ;;  %v1878_v37 = vpack.c.bf16 %v800_v36, %v799_v34  ;;  %v771_v41 = vld [vmem:[#allocation8 + $0x50] sm:$0xff]  ;;  %v1026_v36 = vld [vmem:[#allocation10] sm:$0xff] }
 0x15d   :  { %v1341_v49 = vadd.f32 %v1340_v47, %v1339_v39  ;;  %v448_v50 = vadd.f32 %v447_v18, %v363_v40  ;;  %620 = vmatprep.mubr.f32.mxu0 %v457_v42  ;;  %v466_v54 = vrot.slane %v457_v42, 7  ;;  %v481_v55 = vrot.slane %v457_v42, 1  ;;  %1837 = vmatpush3.bf16.msra.mxu0 %v1836_v35  ;;  %v788_v39 = vld [vmem:[#allocation8 + $0xd8] sm:$0xff] }
 0x15e   :  { %1839 = vmatprep.subr.bf16.mxu0 %v1838_v38  ;;  %v787_v38 = vld [vmem:[#allocation8 + $0xd0] sm:$0xff]  ;;  %v772_v42 = vld [vmem:[#allocation8 + $0x58] sm:$0xff] }
 0x15f   :  { %v368_v59 = vadd.f32 %v1341_v49, %v1278_v8  ;;  %v458_v56 = vmax.f32 %v448_v50, 0.0  ;;  %v467_v61 = vsel %vm179_vm1, %v464_v31, %v466_v54  ;;  %v482_v62 = vsel %vm213_vm0, %v480_v45, %v481_v55  ;;  %v769_v31 = vld [vmem:[#allocation8 + $0x40] sm:$0xff]  ;;  %v802_v45 = vld [vmem:[#allocation8 + $0x148] sm:$0xff] }
 0x160   :  { %621 = vmatmul.mubr.f32.gmra.mrb[10].mxu0 %v467_v61  ;;  %1624 = vmatprep.mubr.f32.mxu1 %v482_v62  ;;  %v1870_v8 = vpack.c.bf16 %v796_v1, %v795_v0  ;;  %v1852_v35 = vpack.c.bf16 %v770_v32, %v769_v31  ;;  %v1854_v40 = vpack.c.bf16 %v788_v39, %v787_v38  ;;  %v790_v49 = vld [vmem:[#allocation8 + $0xe8] sm:$0xff]  ;;  %v791_v61 = vld [vmem:[#allocation8 + $0xf0] sm:$0xff]  ;;  %v792_v62 = vld [vmem:[#allocation8 + $0xf8] sm:$0xff] }
 0x161   :  { %v468_v4 = vrot.slane %v458_v56, 7  ;;  %v483_v6 = vrot.slane %v458_v56, 1  ;;  %625 = vmatprep.mubr.f32.mxu0 %v458_v56  ;;  %v453_v7 = vadd.f32 %v1591_v17, %v368_v59  ;;  %1841 = vmatpush3.bf16.msra.mxu0 %v1840_v48  ;;  %v798_v17 = vld [vmem:[#allocation8 + $0x128] sm:$0xff]  ;;  %v1856_v44 = vpack.c.bf16 %v772_v42, %v771_v41  ;;  %v789_v48 = vld [vmem:[#allocation8 + $0xe0] sm:$0xff]  ;;  %v804_v59 = vld [vmem:[#allocation8 + $0x158] sm:$0xff] }
 0x162   :  { %1843 = vmatprep.subr.bf16.mxu0 %v1842_v57  ;;  %v1874_v28 = vpack.c.bf16 %v798_v17, %v797_v16  ;;  %v1882_v47 = vpack.c.bf16 %v802_v45, %v801_v43  ;;  %v1858_v50 = vpack.c.bf16 %v790_v49, %v789_v48  ;;  %v803_v57 = vld [vmem:[#allocation8 + $0x150] sm:$0xff]  ;;  %v1862_v63 = vpack.c.bf16 %v792_v62, %v791_v61  ;;  %v776_v1 = vld [vmem:[#allocation8 + $0x78] sm:$0xff] }
 0x163   :  { %v469_v10 = vsel %vm179_vm1, %v466_v54, %v468_v4  ;;  %v484_v11 = vsel %vm213_vm0, %v481_v55, %v483_v6  ;;  %v459_v12 = vmax.f32 %v453_v7, 0.0  ;;  %v773_v54 = vld [vmem:[#allocation8 + $0x60] sm:$0xff]  ;;  %v774_v55 = vld [vmem:[#allocation8 + $0x68] sm:$0xff]  ;;  %v1886_v56 = vpack.c.bf16 %v804_v59, %v803_v57  ;;  %v775_v0 = vld [vmem:[#allocation8 + $0x70] sm:$0xff] }
 0x164   :  { %1285 = vmatmul.mubr.msk.f32.gmra.mrb[12].mxu0 %vm164_vm5, %v469_v10  ;;  %1625 = vmatmul.mubr.msk.f32.vlgmr.msra.gmra.mrb[4].mxu1 %vm206_vm3, %v484_v11  ;;  %v1860_v58 = vpack.c.bf16 %v774_v55, %v773_v54  ;;  %v1864_v3 = vpack.c.bf16 %v776_v1, %v775_v0  ;;  %v807_v7 = vld [vmem:[#allocation8 + $0x170] sm:$0xff]  ;;  %v1042_v10 = vld [vmem:[#allocation10 + $0x80] sm:$0xff]  ;;  %v1043_v11 = vld [vmem:[#allocation10 + $0x88] sm:$0xff] }
 0x165   :  { %630 = vmatprep.mubr.f32.mxu0 %v459_v12  ;;  %v470_v18 = vrot.slane %v459_v12, 7  ;;  %v485_v19 = vrot.slane %v459_v12, 1  ;;  %1869 = vmatpush3.bf16.msra.mxu1 %v2317_v5  ;;  %v785_v5 = vld [vmem:[#allocation8 + $0xc0] sm:$0xff]  ;;  %v1898_v12 = vpack.c.bf16 %v1043_v11, %v1042_v10  ;;  %v1044_v42 = vld [vmem:[#allocation10 + $0x90] sm:$0xff]  ;;  %v1045_v43 = vld [vmem:[#allocation10 + $0x98] sm:$0xff] }
 0x166   :  { %1845 = vmatpush3.bf16.msra.mxu0 %v1844_v9  ;;  %1871 = vmatprep.subr.bf16.mxu1 %v1870_v8  ;;  %v1850_v30 = vpack.c.bf16 %v786_v29, %v785_v5  ;;  %v808_v9 = vld [vmem:[#allocation8 + $0x178] sm:$0xff]  ;;  %v1028_v57 = vld [vmem:[#allocation10 + $0x10] sm:$0xff]  ;;  %v1047_v0 = vld [vmem:[#allocation10 + $0xa8] sm:$0xff] }
 0x167   :  { %v471_v22 = vsel %vm179_vm1, %v468_v4, %v470_v18  ;;  %v486_v23 = vsel %vm213_vm0, %v483_v6, %v485_v19  ;;  %v487_v25 = vsel %vm213_vm0, %v485_v19, %v2292_v53  ;;  %1847 = vmatprep.subr.bf16.mxu0 %v1846_v13  ;;  %v806_v4 = vld [vmem:[#allocation8 + $0x168] sm:$0xff]  ;;  %v1058_v13 = vld [vmem:[#allocation10 + $0x100] sm:$0xff]  ;;  %v1029_v62 = vld [vmem:[#allocation10 + $0x18] sm:$0xff] }
 0x168   :  { %631 = vmatmul.mubr.f32.gmra.mrb[14].mxu0 %v471_v22  ;;  %1627 = vmatprep.mubr.f32.mxu1 %v486_v23  ;;  %v1890_v6 = vpack.c.bf16 %v806_v4, %v805_v2  ;;  %v2342_v15 = vpack.c.bf16 %v1059_v14, %v1058_v13  ;;  %v1283_v22 = vld [vmem:[%s2438_s4] ss:$0 sm:$0xff]  ;;  %v1060_v2 = vld [vmem:[#allocation10 + $0x110] sm:$0xff]  ;;  %v1031_v10 = vld [vmem:[#allocation10 + $0x28] sm:$0xff] }
 0x169   :  { %1628 = vmatmul.mubr.msk.f32.gmra.mrb[6].mxu1 %vm208_vm4, %v487_v25  ;;  %v1048_v11 = vld [vmem:[#allocation10 + $0xb0] sm:$0xff] }
 0x16a   :  { %1873 = vmatpush3.bf16.msra.mxu1 %v1870_v8  ;;  %1849 = vmatpush3.bf16.msra.mxu0 %v1848_v21  ;;  %v1894_v8 = vpack.c.bf16 %v808_v9, %v807_v7  ;;  %v1904_v7 = vpack.c.bf16 %v1029_v62, %v1028_v57  ;;  %v1054_v57 = vld [vmem:[#allocation10 + $0xe0] sm:$0xff] }
 0x16b   :  { %1875 = vmatprep.subr.bf16.mxu1 %v1874_v28  ;;  %1851 = vmatprep.subr.bf16.mxu0 %v1850_v30 }
 0x16e   :  { %1877 = vmatpush3.bf16.msra.mxu1 %v1874_v28  ;;  %1853 = vmatpush3.bf16.msra.mxu0 %v1852_v35 }
 0x16f   :  { %1879 = vmatprep.subr.bf16.mxu1 %v1878_v37  ;;  %1855 = vmatprep.subr.bf16.mxu0 %v1854_v40 }
 0x172   :  { %1881 = vmatpush3.bf16.msra.mxu1 %v1878_v37  ;;  %1857 = vmatpush3.bf16.msra.mxu0 %v1856_v44  ;;  %v1027_v37 = vld [vmem:[#allocation10 + $0x8] sm:$0xff] }
 0x173   :  { %1883 = vmatprep.subr.bf16.mxu1 %v1882_v47  ;;  %1859 = vmatprep.subr.bf16.mxu0 %v1858_v50 }
 0x176   :  { %1885 = vmatpush3.bf16.msra.mxu1 %v1882_v47  ;;  %1861 = vmatpush3.bf16.msra.mxu0 %v1860_v58  ;;  %v1900_v47 = vpack.c.bf16 %v1027_v37, %v1026_v36  ;;  %v1034_v37 = vld [vmem:[#allocation10 + $0x40] sm:$0xff] }
 0x177   :  { %1887 = vmatprep.subr.bf16.mxu1 %v1886_v56  ;;  %1863 = vmatprep.subr.bf16.mxu0 %v1862_v63  ;;  %v1046_v63 = vld [vmem:[#allocation10 + $0xa0] sm:$0xff] }
 0x178   :  { %v1906_v9 = vpack.c.bf16 %v1047_v0, %v1046_v63  ;;  %v1068_v63 = vld [vmem:[#allocation10 + $0x150] sm:$0xff]  ;;  %v1069_v0 = vld [vmem:[#allocation10 + $0x158] sm:$0xff] }
 0x17a   :  { %1889 = vmatpush3.bf16.msra.mxu1 %v1886_v56  ;;  %1865 = vmatpush3.bf16.msra.mxu0 %v1864_v3  ;;  %v1061_v3 = vld [vmem:[#allocation10 + $0x118] sm:$0xff] }
 0x17b   :  { %1891 = vmatprep.subr.bf16.mxu1 %v1890_v6  ;;  %1899 = vmatprep.subr.bf16.mxu0 %v1898_v12  ;;  %v1934_v14 = vpack.c.bf16 %v1061_v3, %v1060_v2  ;;  %v1950_v2 = vpack.c.bf16 %v1069_v0, %v1068_v63  ;;  %v1056_v3 = vld [vmem:[#allocation10 + $0xf0] sm:$0xff] }
 0x17e   :  { %1893 = vmatpush3.bf16.msra.mxu1 %v1890_v6 }
 0x17f   :  { %1895 = vmatprep.subr.bf16.mxu1 %v1894_v8 }
 0x182   :  { %1897 = vmatpush3.bf16.msra.mxu1 %v1894_v8  ;;  %v1030_v8 = vld [vmem:[#allocation10 + $0x20] sm:$0xff] }
 0x183   :  { %1931 = vmatprep.subr.bf16.mxu1 %v2342_v15 }
 0x22f   :  { %v1394_v16 = vpop.f32.mrb[8].mxu0 }
 0x230   :  { %v1395_v17 = vpop.f32.mrb[9].mxu0 }
 0x231   :  { %v1396_v18 = vadd.f32 %v1395_v17, %v1394_v16  ;;  %v1049_v16 = vld [vmem:[#allocation10 + $0xb8] sm:$0xff]  ;;  %v1062_v17 = vld [vmem:[#allocation10 + $0x120] sm:$0xff] }
 0x233   :  { %v1397_v19 = vpop.f32.mrb[10].mxu0  ;;  %v618_v29 = vadd.f32 %v1396_v18, %v1283_v22  ;;  %v1063_v18 = vld [vmem:[#allocation10 + $0x128] sm:$0xff] }
 0x234   :  { %v1398_v21 = vpop.f32.mrb[11].mxu0 }
 0x235   :  { %v1399_v23 = vadd.f32 %v1398_v21, %v1397_v19 }
 0x237   :  { %v1400_v25 = vpop.f32.mrb[12].mxu0  ;;  %v623_v28 = vadd.f32 %v1399_v23, %v1283_v22  ;;  %v1626_v5 = vpop.f32.mrb[4].mxu1  ;;  %v1938_v23 = vpack.c.bf16 %v1063_v18, %v1062_v17 }
 0x238   :  { %v1401_v30 = vpop.f32.mrb[13].mxu0  ;;  %v702_v31 = vpop.f32.mrb[5].mxu1 }
 0x239   :  { %v708_v32 = vadd.f32 %v1626_v5, %v623_v28  ;;  %v1402_v34 = vadd.f32 %v1401_v30, %v1400_v25  ;;  %v703_v35 = vadd.f32 %v702_v31, %v618_v29  ;;  %v1032_v30 = vld [vmem:[#allocation10 + $0x30] sm:$0xff]  ;;  %v1033_v31 = vld [vmem:[#allocation10 + $0x38] sm:$0xff] }
 0x23b   :  { %v2349_v38 = vadd.f32 %v708_v32, %v2262_v51  ;;  %v2352_v39 = vadd.f32 %v703_v35, %v2259_v46  ;;  %v1403_v40 = vpop.f32.mrb[14].mxu0  ;;  %v628_v41 = vadd.f32 %v1402_v34, %v1283_v22  ;;  %v1902_v46 = vpack.c.bf16 %v1045_v43, %v1044_v42  ;;  %v1051_v32 = vld [vmem:[#allocation10 + $0xc8] sm:$0xff]  ;;  %v1064_v42 = vld [vmem:[#allocation10 + $0x130] sm:$0xff]  ;;  %v1065_v43 = vld [vmem:[#allocation10 + $0x138] sm:$0xff] }
 0x23c   :  { %v1404_v44 = vpop.f32.mrb[15].mxu0  ;;  %v1629_v45 = vpop.f32.mrb[6].mxu1  ;;  %v1912_v34 = vpack.c.bf16 %v1033_v31, %v1032_v30 }
 0x23d   :  { %v729_v48 = vrot.slane %v2352_v39, 7  ;;  %v1405_v49 = vadd.f32 %v1404_v44, %v1403_v40  ;;  %v712_v50 = vpop.f32.mrb[7].mxu1  ;;  %880 = vmatprep.mubr.f32.mxu0 %v2352_v39  ;;  %v745_v54 = vrot.slane %v2352_v39, 1  ;;  %v746_v51 = vrot.slane %v2349_v38, 1  ;;  %v1035_v40 = vld [vmem:[#allocation10 + $0x48] sm:$0xff] }
 0x23e   :  { %v713_v55 = vadd.f32 %v712_v50, %v628_v41  ;;  %v731_v61 = vrot.slane %v2349_v38, 7  ;;  %v1916_v41 = vpack.c.bf16 %v1035_v40, %v1034_v37  ;;  %v1942_v44 = vpack.c.bf16 %v1065_v43, %v1064_v42  ;;  %v1037_v50 = vld [vmem:[#allocation10 + $0x58] sm:$0xff] }
 0x23f   :  { %v633_v58 = vadd.f32 %v1405_v49, %v1283_v22  ;;  %v730_v59 = vsel %vm179_vm1, %v2274_v26, %v729_v48  ;;  %v747_v56 = vsel %vm213_vm0, %v745_v54, %v746_v51  ;;  %v1910_v22 = vpack.c.bf16 %v1049_v16, %v1048_v11  ;;  %v1036_v49 = vld [vmem:[#allocation10 + $0x50] sm:$0xff]  ;;  %v1071_v11 = vld [vmem:[#allocation10 + $0x168] sm:$0xff] }
 0x240   :  { %v2363_v1 = vadd.f32 %v713_v55, %v2269_v20  ;;  %1289 = vmatmul.mubr.msk.f32.vlgmr.msra.gmra.mrb[16].mxu0 %vm162_vm2, %v730_v59  ;;  %1662 = vmatprep.mubr.f32.mxu1 %v747_v56  ;;  %v732_v12 = vsel %vm179_vm1, %v729_v48, %v731_v61  ;;  %v1920_v54 = vpack.c.bf16 %v1037_v50, %v1036_v49  ;;  %v1067_v55 = vld [vmem:[#allocation10 + $0x148] sm:$0xff]  ;;  %v1038_v56 = vld [vmem:[#allocation10 + $0x60] sm:$0xff] }
 0x241   :  { %v718_v4 = vadd.f32 %v1629_v45, %v633_v58  ;;  %885 = vmatprep.mubr.f32.mxu0 %v2349_v38  ;;  %1901 = vmatpush3.bf16.msra.mxu0 %v1900_v47  ;;  %v1052_v45 = vld [vmem:[#allocation10 + $0xd0] sm:$0xff]  ;;  %v1053_v47 = vld [vmem:[#allocation10 + $0xd8] sm:$0xff]  ;;  %v1055_v58 = vld [vmem:[#allocation10 + $0xe8] sm:$0xff] }
 0x242   :  { %v748_v6 = vrot.slane %v2363_v1, 1  ;;  %1903 = vmatprep.subr.bf16.mxu0 %v1902_v46  ;;  %v733_v13 = vrot.slane %v2363_v1, 7  ;;  %v1918_v48 = vpack.c.bf16 %v1053_v47, %v1052_v45  ;;  %v1922_v59 = vpack.c.bf16 %v1055_v58, %v1054_v57 }
 0x243   :  { %v2370_v20 = vadd.f32 %v718_v4, %v2276_v27  ;;  %v1908_v27 = vpack.c.bf16 %v1031_v10, %v1030_v8  ;;  %v1057_v4 = vld [vmem:[#allocation10 + $0xf8] sm:$0xff]  ;;  %v1070_v10 = vld [vmem:[#allocation10 + $0x160] sm:$0xff] }
 0x244   :  { %886 = vmatmul.mubr.f32.gmra.mrb[18].mxu0 %v732_v12  ;;  %v749_v19 = vsel %vm213_vm0, %v746_v51, %v748_v6  ;;  %v734_v25 = vsel %vm179_vm1, %v731_v61, %v733_v13  ;;  %v1066_v51 = vld [vmem:[#allocation10 + $0x140] sm:$0xff]  ;;  %v1039_v61 = vld [vmem:[#allocation10 + $0x68] sm:$0xff]  ;;  %v1954_v12 = vpack.c.bf16 %v1071_v11, %v1070_v10 }
 0x245   :  { %890 = vmatprep.mubr.f32.mxu0 %v2363_v1  ;;  %1663 = vmatmul.mubr.msk.f32.vlgmr.msra.gmra.mrb[8].mxu1 %vm206_vm3, %v749_v19  ;;  %v750_v21 = vrot.slane %v2370_v20, 1  ;;  %v735_v29 = vrot.slane %v2370_v20, 7  ;;  %v1946_v46 = vpack.c.bf16 %v1067_v55, %v1066_v51  ;;  %v1924_v62 = vpack.c.bf16 %v1039_v61, %v1038_v56  ;;  %v1288_v19 = vld [vmem:[%s2440_s6] ss:$0 sm:$0xff] }
 0x246   :  { %1905 = vmatpush3.bf16.msra.mxu0 %v1904_v7  ;;  %1933 = vmatpush3.bf16.msra.mxu1 %v2342_v15  ;;  %v1050_v15 = vld [vmem:[#allocation10 + $0xc0] sm:$0xff]  ;;  %v1040_v7 = vld [vmem:[#allocation10 + $0x70] sm:$0xff] }
 0x247   :  { %v751_v28 = vsel %vm213_vm0, %v748_v6, %v750_v21  ;;  %v752_v5 = vsel %vm213_vm0, %v750_v21, %v2292_v53  ;;  %1907 = vmatprep.subr.bf16.mxu0 %v1906_v9  ;;  %1935 = vmatprep.subr.bf16.mxu1 %v1934_v14  ;;  %v736_v35 = vsel %vm179_vm1, %v733_v13, %v735_v29  ;;  %v1041_v9 = vld [vmem:[#allocation10 + $0x78] sm:$0xff]  ;;  %v1072_v13 = vld [vmem:[#allocation10 + $0x170] sm:$0xff] }
 0x248   :  { %1290 = vmatmul.mubr.msk.f32.gmra.mrb[20].mxu0 %vm164_vm5, %v734_v25  ;;  %1665 = vmatprep.mubr.f32.mxu1 %v751_v28  ;;  %v1914_v36 = vpack.c.bf16 %v1051_v32, %v1050_v15  ;;  %v1926_v6 = vpack.c.bf16 %v1057_v4, %v1056_v3  ;;  %v1928_v8 = vpack.c.bf16 %v1041_v9, %v1040_v7  ;;  %v1293_v7 = vld [vmem:[%s2442_s8] ss:$0 sm:$0xff]  ;;  %s2119_s8 = smov [#allocation11]  }
 0x249   :  { %895 = vmatprep.mubr.f32.mxu0 %v2370_v20  ;;  %1666 = vmatmul.mubr.msk.f32.gmra.mrb[10].mxu1 %vm208_vm4, %v752_v5  ;;  %s1264_s11 = sshll.u32 %s2119_s8, 4  ;;  %s1265_s11 = int_to_ptr.vmem [resolvable:$true] %s1264_s11 }
 0x24a   :  { %1909 = vmatpush3.bf16.msra.mxu0 %v1908_v27  ;;  %1937 = vmatpush3.bf16.msra.mxu1 %v1934_v14  ;;  %v1073_v14 = vld [vmem:[#allocation10 + $0x178] sm:$0xff]  ;;  %s2081_s13 = scalar_lea.vmem %s1265_s11, 512  ;;  %p2086_p13 = scmp.lt.s32.totalorder %s1265_s11, %s1265_s11 }
 0x24b   :  { %1911 = vmatprep.subr.bf16.mxu0 %v1910_v22  ;;  %1939 = vmatprep.subr.bf16.mxu1 %v1938_v23  ;;  %v1958_v16 = vpack.c.bf16 %v1073_v14, %v1072_v13  ;;  %p2082_p12 = scmp.ne.s32.totalorder %s1265_s11, %s2081_s13  ;;  %p2087_p0 = scmp.lt.s32.totalorder %s2081_s13, %s2081_s13 }
 0x24c   :  { %896 = vmatmul.mubr.f32.gmra.mrb[22].mxu0 %v736_v35 }
 0x24d   :  { %p2088_p1 = por %p2087_p0, %p2086_p13 }
 0x24e   :  { %1913 = vmatpush3.bf16.msra.mxu0 %v1912_v34  ;;  %1941 = vmatpush3.bf16.msra.mxu1 %v1938_v23 }
 0x24f   :  { %1915 = vmatprep.subr.bf16.mxu0 %v1914_v36  ;;  %1943 = vmatprep.subr.bf16.mxu1 %v1942_v44  ;;  %p2089_p2 = pnand %p2088_p1, %p2082_p12 }
 0x252   :  { %1917 = vmatpush3.bf16.msra.mxu0 %v1916_v41  ;;  %1945 = vmatpush3.bf16.msra.mxu1 %v1942_v44 }
 0x253   :  { %1919 = vmatprep.subr.bf16.mxu0 %v1918_v48  ;;  %1947 = vmatprep.subr.bf16.mxu1 %v1946_v46 }
 0x256   :  { %1921 = vmatpush3.bf16.msra.mxu0 %v1920_v54  ;;  %1949 = vmatpush3.bf16.msra.mxu1 %v1946_v46 }
 0x257   :  { %1923 = vmatprep.subr.bf16.mxu0 %v1922_v59  ;;  %1951 = vmatprep.subr.bf16.mxu1 %v1950_v2 }
 0x25a   :  { %1925 = vmatpush3.bf16.msra.mxu0 %v1924_v62  ;;  %1953 = vmatpush3.bf16.msra.mxu1 %v1950_v2 }
 0x25b   :  { %1927 = vmatprep.subr.bf16.mxu0 %v1926_v6  ;;  %1955 = vmatprep.subr.bf16.mxu1 %v1954_v12 }
 0x25e   :  { %1929 = vmatpush3.bf16.msra.mxu0 %v1928_v8  ;;  %1957 = vmatpush3.bf16.msra.mxu1 %v1954_v12 }
 0x25f   :  { %1959 = vmatprep.subr.bf16.mxu1 %v1958_v16 }
 0x262   :  { %1961 = vmatpush3.bf16.msra.mxu1 %v1958_v16 }
 0x313   :  { %v1458_v17 = vpop.f32.mrb[16].mxu0 }
 0x314   :  { %v1459_v18 = vpop.f32.mrb[17].mxu0 }
 0x315   :  { %v1460_v21 = vadd.f32 %v1459_v18, %v1458_v17 }
 0x317   :  { %v1461_v27 = vpop.f32.mrb[18].mxu0  ;;  %v883_v22 = vadd.f32 %v1460_v21, %v1288_v19 }
 0x318   :  { %v1462_v23 = vpop.f32.mrb[19].mxu0  ;;  %v1664_v25 = vpop.f32.mrb[8].mxu1 }
 0x319   :  { %v1463_v28 = vadd.f32 %v1462_v23, %v1461_v27  ;;  %v967_v5 = vpop.f32.mrb[9].mxu1 }
 0x31a   :  { %v968_v29 = vadd.f32 %v967_v5, %v883_v22 }
 0x31b   :  { %v888_v30 = vadd.f32 %v1463_v28, %v1288_v19  ;;  %v1464_v31 = vpop.f32.mrb[20].mxu0 }
 0x31c   :  { %v986_v15 = vmax.f32 %v968_v29, 0.0  ;;  %v1465_v32 = vpop.f32.mrb[21].mxu0  ;;  %v1667_v34 = vpop.f32.mrb[10].mxu1 }
 0x31d   :  { %v973_v35 = vadd.f32 %v1664_v25, %v888_v30  ;;  %v1466_v36 = vadd.f32 %v1465_v32, %v1464_v31  ;;  %v977_v37 = vpop.f32.mrb[11].mxu1 }
 0x31e   :  { %v994_v40 = vrot.slane %v986_v15, 7  ;;  %1145 = vmatprep.mubr.f32.mxu0 %v986_v15  ;;  %v1010_v44 = vrot.slane %v986_v15, 1 }
 0x31f   :  { %v987_v41 = vmax.f32 %v973_v35, 0.0  ;;  %v893_v42 = vadd.f32 %v1466_v36, %v1288_v19  ;;  %v1467_v43 = vpop.f32.mrb[22].mxu0 }
 0x320   :  { %v1468_v45 = vpop.f32.mrb[23].mxu0  ;;  %v995_v47 = vsel %vm179_vm1, %v2274_v26, %v994_v40 }
 0x321   :  { %v996_v48 = vrot.slane %v987_v41, 7  ;;  %v1011_v49 = vrot.slane %v987_v41, 1  ;;  %v978_v50 = vadd.f32 %v977_v37, %v893_v42  ;;  %v1469_v54 = vadd.f32 %v1468_v45, %v1467_v43  ;;  %1294 = vmatmul.mubr.msk.f32.vlgmr.msra.gmra.mrb[24].mxu0 %vm162_vm2, %v995_v47 }
 0x322   :  { %1150 = vmatprep.mubr.f32.mxu0 %v987_v41 }
 0x323   :  { %v988_v51 = vmax.f32 %v978_v50, 0.0  ;;  %v898_v55 = vadd.f32 %v1469_v54, %v1288_v19  ;;  %v1012_v46 = vsel %vm213_vm0, %v1010_v44, %v1011_v49  ;;  %v997_v57 = vsel %vm179_vm1, %v994_v40, %v996_v48 }
 0x324   :  { %1700 = vmatprep.mubr.f32.mxu1 %v1012_v46 }
 0x325   :  { %v998_v58 = vrot.slane %v988_v51, 7  ;;  %v1013_v59 = vrot.slane %v988_v51, 1  ;;  %1151 = vmatmul.mubr.f32.gmra.mrb[26].mxu0 %v997_v57  ;;  %v983_v56 = vadd.f32 %v1667_v34, %v898_v55 }
 0x326   :  { %1155 = vmatprep.mubr.f32.mxu0 %v988_v51 }
 0x327   :  { %v1014_v26 = vsel %vm213_vm0, %v1011_v49, %v1013_v59  ;;  %v999_v61 = vsel %vm179_vm1, %v996_v48, %v998_v58  ;;  %v989_v62 = vmax.f32 %v983_v56, 0.0 }
 0x328   :  { %1701 = vmatmul.mubr.msk.f32.vlgmr.msra.gmra.mrb[12].mxu1 %vm206_vm3, %v1014_v26 }
 0x329   :  { %1295 = vmatmul.mubr.msk.f32.gmra.mrb[28].mxu0 %vm164_vm5, %v999_v61  ;;  %v1015_v24 = vrot.slane %v989_v62, 1  ;;  %v1000_v63 = vrot.slane %v989_v62, 7 }
 0x32a   :  { %1160 = vmatprep.mubr.f32.mxu0 %v989_v62 }
 0x32b   :  { %v1016_v0 = vsel %vm213_vm0, %v1013_v59, %v1015_v24  ;;  %v1001_v2 = vsel %vm179_vm1, %v998_v58, %v1000_v63  ;;  %v1017_v3 = vsel %vm213_vm0, %v1015_v24, %v2292_v53 }
 0x32c   :  { %1703 = vmatprep.mubr.f32.mxu1 %v1016_v0 }
 0x32d   :  { %1161 = vmatmul.mubr.f32.gmra.mrb[30].mxu0 %v1001_v2  ;;  %1704 = vmatmul.mubr.msk.f32.gmra.mrb[14].mxu1 %vm208_vm4, %v1017_v3 }
 0x3f4   :  { %v1522_v33 = vpop.f32.mrb[24].mxu0 }
 0x3f5   :  { %v1523_v4 = vpop.f32.mrb[25].mxu0 }
 0x3f6   :  { %v1524_v6 = vadd.f32 %v1523_v4, %v1522_v33 }
 0x3f8   :  { %v1525_v60 = vpop.f32.mrb[26].mxu0  ;;  %v1148_v11 = vadd.f32 %v1524_v6, %v1293_v7 }
 0x3f9   :  { %v1526_v9 = vpop.f32.mrb[27].mxu0 }
 0x3fa   :  { %v1527_v8 = vadd.f32 %v1526_v9, %v1525_v60 }
 0x3fb   :  { %v1702_v10 = vpop.f32.mrb[12].mxu1 }
 0x3fc   :  { %v1153_v12 = vadd.f32 %v1527_v8, %v1293_v7  ;;  %v1528_v13 = vpop.f32.mrb[28].mxu0  ;;  %v1232_v53 = vpop.f32.mrb[13].mxu1 }
 0x3fd   :  { %v1233_v14 = vadd.f32 %v1232_v53, %v1148_v11  ;;  %v1529_v16 = vpop.f32.mrb[29].mxu0 }
 0x3fe   :  { %v1238_v17 = vadd.f32 %v1702_v10, %v1153_v12  ;;  %v1530_v52 = vadd.f32 %v1529_v16, %v1528_v13 }
 0x3ff   :  { %v1251_v18 = vadd.f32 %v1233_v14, %v2352_v39 }
 0x400   :  { %v1252_v19 = vadd.f32 %v1238_v17, %v2349_v38  ;;  %v1531_v21 = vpop.f32.mrb[30].mxu0  ;;  %v1705_v27 = vpop.f32.mrb[14].mxu1  ;;  %v1158_v22 = vadd.f32 %v1530_v52, %v1293_v7 }
 0x401   :  { %1255 = vst [vmem:[#allocation11] sm:$0xff] %v1251_v18  ;;  %v1532_v23 = vpop.f32.mrb[31].mxu0  ;;  %v1242_v25 = vpop.f32.mrb[15].mxu1 }
 0x402   :  { %1256 = vst [vmem:[#allocation11 + $0x8] sm:$0xff] %v1252_v19  ;;  %v1533_v28 = vadd.f32 %v1532_v23, %v1531_v21  ;;  %v1243_v5 = vadd.f32 %v1242_v25, %v1158_v22 }
 0x404   :  { %v1163_v29 = vadd.f32 %v1533_v28, %v1293_v7  ;;  %v1253_v30 = vadd.f32 %v1243_v5, %v2363_v1 }
 0x406   :  { %v1248_v31 = vadd.f32 %v1705_v27, %v1163_v29  ;;  %1257 = vst [vmem:[#allocation11 + $0x10] sm:$0xff] %v1253_v30 }
 0x408   :  { %v1254_v39 = vadd.f32 %v1248_v31, %v2370_v20 }
 0x40a   :  { %1258 = vst [vmem:[#allocation11 + $0x18] sm:$0xff] %v1254_v39 }
 0x40b   :  { %2092 = shalt.err (!%p2089_p2)
}
 0x40c   :  { %s2093_s14 = scalar_lea.hbm %s2443_s9, 512 }
 0x40d   :  { %p2094_p3 = scmp.ne.s32.totalorder %s2443_s9, %s2093_s14  ;;  %p2097_p4 = scmp.lt.u32.totalorder %s2093_s14, %s2443_s9 }
 0x40f   :  { %p2099_p5 = pnand %p2097_p4, %p2094_p3 }
 0x411   :  { %2102 = shalt.err (!%p2099_p5)
}
 0x412   :  { %1270 = dma.vmem_to_hbm [thread:$0]  %s1265_s11, 512, %s2443_s9, [#allocation4], %s2113_s21, %s2113_s21, %s2114_s22  }
 0x413   :  { %2109 = dma.done.wait [#allocation4], 512  }
 0x414   :  { %2110 = vsyncadd [#allocation4], 4294966784 }
 0x415   :  { %1274 = vsyncpa [#allocation3], 1 }
 0x416   :  { %1275 = vsyncpa [#allocation6], 1 }
 0x417   :  { %1276 = vsyncpa [#allocation9], 1 }
 0x418   :  { %1277 = vsyncpa [#allocation4], 1 }

</bundles_post_ra>
